<compile_context>
chip_gen: v7x
topology: tpu7x:2x2x1
jax: 0.10.0
libtpu: 0.0.40
codegen_flags: <defaults>
</compile_context>

<pallas_src>
import jax
import jax.numpy as jnp
from jax.experimental import pallas as pl
from jax.experimental.pallas import tpu as pltpu


# ------------------------------ small helpers ------------------------------

def _round8(n):
    return ((n + 7) // 8) * 8


def _cdiv(a, b):
    return -(-a // b)


def _silu(x):
    return x * jax.nn.sigmoid(x)


def _layernorm(x, gamma, beta, eps=1e-5):
    mu = jnp.mean(x, axis=-1, keepdims=True)
    xc = x - mu
    var = jnp.mean(xc * xc, axis=-1, keepdims=True)
    return xc * jax.lax.rsqrt(var + eps) * gamma + beta


def _default_act_dtype():
    """Elementwise (post-matmul) dtype: bf16 on chips with a bf16 VPU/EUP
    (v6e / v7x), f32 otherwise (v5e and older have no bf16 vector ALU)."""
    try:
        kind = jax.devices()[0].device_kind.lower()
    except Exception:
        return jnp.bfloat16
    if any(s in kind for s in ("v6", "v7", "7x")):
        return jnp.bfloat16
    return jnp.float32


# ---------------- single-buffered resident-operand probe -------------------

_WEIGHT_PIPELINE_MODE = None  # cached: (pl.Buffered(1),) or (None,)


def _probe_kernel(x_ref, o_ref):
    o_ref[...] = x_ref[...] + 1.0


def _weight_pipeline_mode():
    """Return pl.Buffered(1) if this JAX/Mosaic accepts single-buffered
    constant-index operands (the second pipeline buffer is dead weight for
    VMEM-resident weights), else None.  Probed once on a tiny kernel."""
    global _WEIGHT_PIPELINE_MODE
    if _WEIGHT_PIPELINE_MODE is None:
        try:
            spec = pl.BlockSpec((8, 128), lambda i: (0, 0),
                                pipeline_mode=pl.Buffered(1))
            out = pl.pallas_call(
                _probe_kernel,
                out_shape=jax.ShapeDtypeStruct((8, 128), jnp.float32),
                grid=(1,),
                in_specs=[spec],
                out_specs=pl.BlockSpec((8, 128), lambda i: (0, 0)),
            )(jnp.zeros((8, 128), jnp.float32))
            jax.block_until_ready(out)
            _WEIGHT_PIPELINE_MODE = (pl.Buffered(1),)
        except Exception:
            _WEIGHT_PIPELINE_MODE = (None,)
    return _WEIGHT_PIPELINE_MODE[0]


# --------------------------------- kernel ----------------------------------

def _make_flow_mlp_kernel(act_dtype):
    """Fused MLP kernel.  Matmuls: bf16 operands on the MXU with f32
    accumulation + f32 bias.  LayerNorm mean/var/rsqrt stay f32; the
    normalized activation and affine run in `act_dtype` so the next dense()
    needs no extra convert pass when act_dtype == bf16."""

    def kernel(inp_ref,
               w1_ref, b1_ref, g1_ref, be1_ref,
               w2_ref, b2_ref, g2_ref, be2_ref,
               w3_ref, b3_ref, g3_ref, be3_ref,
               w4_ref, b4_ref,
               w5_ref, b5_ref,
               out_ref):
        def dense(h, w_ref, b_ref):
            return jnp.dot(h.astype(jnp.bfloat16), w_ref[...],
                           preferred_element_type=jnp.float32) + b_ref[...]

        def silu(x):                       # f32 in/out; sigmoid on the EUP
            return x * jax.nn.sigmoid(x)

        def layernorm(x, g_ref, be_ref, eps=1e-5):
            mu = jnp.mean(x, axis=-1, keepdims=True)
            xc = x - mu
            var = jnp.mean(xc * xc, axis=-1, keepdims=True)
            xn = (xc * jax.lax.rsqrt(var + eps)).astype(act_dtype)
            return xn * g_ref[...] + be_ref[...]

        h = inp_ref[...]                                         # [TB, K1] f32
        # Linear(dim+1 -> 128) + SiLU + LayerNorm(128)
        h = layernorm(silu(dense(h, w1_ref, b1_ref)), g1_ref, be1_ref)
        # Linear(128 -> 256) + SiLU + LayerNorm(256)
        h = layernorm(silu(dense(h, w2_ref, b2_ref)), g2_ref, be2_ref)
        # Linear(256 -> 512) + SiLU + LayerNorm(512)
        h = layernorm(silu(dense(h, w3_ref, b3_ref)), g3_ref, be3_ref)
        # Linear(512 -> 512) + SiLU
        h = silu(dense(h, w4_ref, b4_ref))
        # Linear(512 -> dim_out_pad), columns >= dim are zero-padded; bf16 store.
        out_ref[...] = dense(h, w5_ref, b5_ref).astype(out_ref.dtype)

    return kernel


_KERNEL_CACHE = {}


def _get_kernel(act_dtype):
    key = jnp.dtype(act_dtype).name
    if key not in _KERNEL_CACHE:
        _KERNEL_CACHE[key] = _make_flow_mlp_kernel(act_dtype)
    return _KERNEL_CACHE[key]


# -------------------------------- wrapper -----------------------------------

def flow_model_forward(x, t, params, *, batch_tile=1024):
    """Reproduces FlowModel.forward(x, t).

    x: [..., dim], t: [..., 1]; leading dims are broadcast (torch.expand),
    concatenated along the last axis and fed through the fused MLP kernel.
    """
    assert x.ndim == t.ndim
    shape = [max(xs, ts) for xs, ts in zip(x.shape, t.shape)]
    x = jnp.broadcast_to(x, (*shape[:-1], x.shape[-1]))
    t = jnp.broadcast_to(t, (*shape[:-1], t.shape[-1]))
    inp = jnp.concatenate([x, t], axis=-1).astype(jnp.float32)   # [..., dim+1]

    lead = inp.shape[:-1]
    dim_in = inp.shape[-1]                                       # dim + 1
    dim_out = params["w5"].shape[-1]
    dim_out_pad = ((dim_out + 127) // 128) * 128                 # lane-dense out
    k1 = _round8(dim_in)                                         # aligned first K

    inp2d = inp.reshape(-1, dim_in)
    B = inp2d.shape[0]

    # ---- batch tile / grid --------------------------------------------------
    batch_tile = max(8, (batch_tile // 8) * 8)
    B8 = _round8(B)
    if B8 <= 8:
        TB = 8
    else:
        # >= 2 (even) grid steps so both v7x TensorCores get work under
        # dimension_semantics=("parallel",); cap rows/step at `batch_tile`
        # (1024 fills the MXU M-dim and amortizes per-step overhead while
        # keeping live VMEM ~10 MiB).
        nb = max(2, _cdiv(B8, batch_tile))
        if nb % 2:
            nb += 1
        TB = min(batch_tile, _round8(_cdiv(B8, nb)))
    pad_rows = (-B) % TB
    # Pad rows to a multiple of TB and the K dim from dim+1 up to round8(dim+1)
    # (w1 rows below are zero-padded to match, so results are unchanged).
    inp2d = jnp.pad(inp2d, ((0, pad_rows), (0, k1 - dim_in)))
    Bp = B + pad_rows
    nb = Bp // TB

    # ---- operands -----------------------------------------------------------
    act_dtype = _default_act_dtype()
    p = params
    w1 = jnp.pad(p["w1"], ((0, k1 - dim_in), (0, 0)))
    w5 = jnp.pad(p["w5"], ((0, 0), (0, dim_out_pad - dim_out)))
    b5 = jnp.pad(p["b5"], ((0, 0), (0, dim_out_pad - dim_out)))
    # bf16 weights for the MXU (halves resident weight VMEM); biases stay f32
    # (added to the f32 accumulator); LN affine params in act_dtype.
    weight_args = (
        w1.astype(jnp.bfloat16), p["b1"],
        p["g1"].astype(act_dtype), p["be1"].astype(act_dtype),
        p["w2"].astype(jnp.bfloat16), p["b2"],
        p["g2"].astype(act_dtype), p["be2"].astype(act_dtype),
        p["w3"].astype(jnp.bfloat16), p["b3"],
        p["g3"].astype(act_dtype), p["be3"].astype(act_dtype),
        p["w4"].astype(jnp.bfloat16), p["b4"],
        w5.astype(jnp.bfloat16), b5,
    )
    # TODO(synk): optional fp8 storage of w3/w4 on v7x (80% of FLOPs) once the
    # downstream accuracy budget is known.

    pm = _weight_pipeline_mode()

    def full(shape):
        # Whole-array block, constant index map (weights resident in VMEM);
        # single-buffered when the runtime supports it.
        nd = len(shape)
        idx = lambda i, _nd=nd: (0,) * _nd
        if pm is not None:
            return pl.BlockSpec(shape, idx, pipeline_mode=pm)
        return pl.BlockSpec(shape, idx)

    in_specs = [pl.BlockSpec((TB, k1), lambda i: (i, 0))]
    in_specs += [full(w.shape) for w in weight_args]

    out = pl.pallas_call(
        _get_kernel(act_dtype),
        # bf16 padded output halves HBM writeback; sliced + upcast below.
        out_shape=jax.ShapeDtypeStruct((Bp, dim_out_pad), jnp.bfloat16),
        grid_spec=pltpu.PrefetchScalarGridSpec(
            num_scalar_prefetch=0,
            grid=(nb,),
            in_specs=in_specs,
            out_specs=pl.BlockSpec((TB, dim_out_pad), lambda i: (i, 0)),
        ),
        compiler_params=pltpu.CompilerParams(
            dimension_semantics=("parallel",),
            # 32 MiB scoped VMEM: above v5e's 16 MiB default, and leaves
            # pipeline headroom inside v7x's 64 MiB physical VMEM.
            vmem_limit_bytes=32 * 1024 * 1024,
        ),
    )(inp2d, *weight_args)

    return out[:B, :dim_out].astype(jnp.float32).reshape(*lead, dim_out)


# --------------------------- parameter creation -----------------------------

def init_params(dim, key):
    """Deterministic init matching the shapes of FlowModel.__init__ (f32 master)."""
    sizes = [(dim + 1, 128), (128, 256), (256, 512), (512, 512), (512, dim)]
    params = {}
    keys = jax.random.split(key, 2 * len(sizes))
    for idx, (fin, fout) in enumerate(sizes):
        bound = 1.0 / jnp.sqrt(fin)
        w = jax.random.uniform(keys[2 * idx], (fin, fout), jnp.float32,
                               -bound, bound)
        b = jax.random.uniform(keys[2 * idx + 1], (1, fout), jnp.float32,
                               -bound, bound)
        params[f"w{idx + 1}"] = w
        params[f"b{idx + 1}"] = b
    # LayerNorm affine params (PyTorch default: weight=1, bias=0)
    for idx, h in enumerate([128, 256, 512], start=1):
        params[f"g{idx}"] = jnp.ones((1, h), jnp.float32)
        params[f"be{idx}"] = jnp.zeros((1, h), jnp.float32)
    return params


# ------------------------------- reference ----------------------------------

def flow_model_reference(x, t, params):
    """Pure-f32 JAX reference of FlowModel.forward."""
    shape = [max(xs, ts) for xs, ts in zip(x.shape, t.shape)]
    x = jnp.broadcast_to(x, (*shape[:-1], x.shape[-1]))
    t = jnp.broadcast_to(t, (*shape[:-1], t.shape[-1]))
    h = jnp.concatenate([x, t], axis=-1)
    p = params
    h = _silu(h @ p["w1"] + p["b1"]); h = _layernorm(h, p["g1"], p["be1"])
    h = _silu(h @ p["w2"] + p["b2"]); h = _layernorm(h, p["g2"], p["be2"])
    h = _silu(h @ p["w3"] + p["b3"]); h = _layernorm(h, p["g3"], p["be3"])
    h = _silu(h @ p["w4"] + p["b4"])
    return h @ p["w5"] + p["b5"]


# ---------------------------------- main -------------------------------------

if __name__ == "__main__":
    key = jax.random.PRNGKey(0)
    k_param, k_x, k_t, k_x2, k_t2 = jax.random.split(key, 5)

    dim = 4
    params = init_params(dim, k_param)

    # Case 1: tiny batch (single 8-row tile; typical sampler usage).
    batch = 8
    x = jax.random.normal(k_x, (batch, dim), jnp.float32)
    t = jax.random.uniform(k_t, (batch, 1), jnp.float32)
    out = jax.block_until_ready(flow_model_forward(x, t, params))
    ref = flow_model_reference(x, t, params)
    assert out.shape == (batch, dim), out.shape
    assert jnp.allclose(out, ref, atol=5e-2, rtol=5e-2), \
        float(jnp.max(jnp.abs(out - ref)))

    # Case 2: larger batch exercising tiling, row padding and the >=2-step grid
    # (TB=152, nb=2, 4 padded rows).
    batch2 = 300
    x2 = jax.random.normal(k_x2, (batch2, dim), jnp.float32)
    t2 = jax.random.uniform(k_t2, (batch2, 1), jnp.float32)
    out2 = jax.block_until_ready(flow_model_forward(x2, t2, params))
    ref2 = flow_model_reference(x2, t2, params)
    assert out2.shape == (batch2, dim), out2.shape
    assert jnp.allclose(out2, ref2, atol=5e-2, rtol=5e-2), \
        float(jnp.max(jnp.abs(out2 - ref2)))

    print("KERNEL_OK")
</pallas_src>

<mosaic_0001>
module attributes {stable_mosaic.version = 11 : i64} {
  func.func @_probe_kernel(%arg0: i32, %arg1: memref<8x128xf32, #tpu.memory_space<vmem>>, %arg2: memref<8x128xf32, #tpu.memory_space<vmem>>) attributes {dimension_semantics = [#tpu.dimension_semantics<arbitrary>], iteration_bounds = array<i64: 1>, scalar_prefetch = 0 : i64, scratch_operands = 0 : i64, tpu.core_type = #tpu.core_type<tc>, window_params = [{pipeline_mode = #tpu.pipeline_mode<synchronous>, transform_indices = @transform_0, window_bounds = array<i64: 8, 128>}, {pipeline_mode = #tpu.pipeline_mode<synchronous>, transform_indices = @transform_1, window_bounds = array<i64: 8, 128>}]} {
    %c0 = arith.constant 0 : index
    %c0_0 = arith.constant 0 : index
    %0 = vector.load %arg1[%c0, %c0_0] : memref<8x128xf32, #tpu.memory_space<vmem>>, vector<8x128xf32>
    %cst = arith.constant 1.000000e+00 : f32
    %1 = vector.broadcast %cst : f32 to vector<8x128xf32>
    %2 = arith.addf %0, %1 : vector<8x128xf32>
    %c0_1 = arith.constant 0 : index
    %c0_2 = arith.constant 0 : index
    %3 = vector.load %arg2[%c0_1, %c0_2] : memref<8x128xf32, #tpu.memory_space<vmem>>, vector<8x128xf32>
    tpu.vector_store %arg2[%c0_1, %c0_2], %2 {strides = array<i32>} : memref<8x128xf32, #tpu.memory_space<vmem>>, vector<8x128xf32>,
    return
  }
  func.func @transform_0(%arg0: i32) -> (i32, i32) {
    %c0_i32 = arith.constant 0 : i32
    %c0_i32_0 = arith.constant 0 : i32
    %c0_i32_1 = arith.constant 0 : i32
    return %c0_i32, %c0_i32_0 : i32, i32
  }
  func.func @transform_1(%arg0: i32) -> (i32, i32) {
    %c0_i32 = arith.constant 0 : i32
    %c0_i32_0 = arith.constant 0 : i32
    %c0_i32_1 = arith.constant 0 : i32
    return %c0_i32, %c0_i32_0 : i32, i32
  }
}

module attributes {stable_mosaic.version = 11 : i64} {
  func.func @kernel(%arg0: i32, %arg1: memref<8x8xf32, #tpu.memory_space<vmem>>, %arg2: memref<8x128xbf16, #tpu.memory_space<vmem>>, %arg3: memref<1x128xf32, #tpu.memory_space<vmem>>, %arg4: memref<1x128xf32, #tpu.memory_space<vmem>>, %arg5: memref<1x128xf32, #tpu.memory_space<vmem>>, %arg6: memref<128x256xbf16, #tpu.memory_space<vmem>>, %arg7: memref<1x256xf32, #tpu.memory_space<vmem>>, %arg8: memref<1x256xf32, #tpu.memory_space<vmem>>, %arg9: memref<1x256xf32, #tpu.memory_space<vmem>>, %arg10: memref<256x512xbf16, #tpu.memory_space<vmem>>, %arg11: memref<1x512xf32, #tpu.memory_space<vmem>>, %arg12: memref<1x512xf32, #tpu.memory_space<vmem>>, %arg13: memref<1x512xf32, #tpu.memory_space<vmem>>, %arg14: memref<512x512xbf16, #tpu.memory_space<vmem>>, %arg15: memref<1x512xf32, #tpu.memory_space<vmem>>, %arg16: memref<512x128xbf16, #tpu.memory_space<vmem>>, %arg17: memref<1x128xf32, #tpu.memory_space<vmem>>, %arg18: memref<8x128xbf16, #tpu.memory_space<vmem>>) attributes {dimension_semantics = [#tpu.dimension_semantics<parallel>], iteration_bounds = array<i64: 1>, scalar_prefetch = 0 : i64, scratch_operands = 0 : i64, tpu.core_type = #tpu.core_type<tc>, window_params = [{transform_indices = @transform_0, window_bounds = array<i64: 8, 8>}, {pipeline_mode = #tpu.pipeline_mode<synchronous>, transform_indices = @transform_1, window_bounds = array<i64: 8, 128>}, {pipeline_mode = #tpu.pipeline_mode<synchronous>, transform_indices = @transform_2, window_bounds = array<i64: 1, 128>}, {pipeline_mode = #tpu.pipeline_mode<synchronous>, transform_indices = @transform_3, window_bounds = array<i64: 1, 128>}, {pipeline_mode = #tpu.pipeline_mode<synchronous>, transform_indices = @transform_4, window_bounds = array<i64: 1, 128>}, {pipeline_mode = #tpu.pipeline_mode<synchronous>, transform_indices = @transform_5, window_bounds = array<i64: 128, 256>}, {pipeline_mode = #tpu.pipeline_mode<synchronous>, transform_indices = @transform_6, window_bounds = array<i64: 1, 256>}, {pipeline_mode = #tpu.pipeline_mode<synchronous>, transform_indices = @transform_7, window_bounds = array<i64: 1, 256>}, {pipeline_mode = #tpu.pipeline_mode<synchronous>, transform_indices = @transform_8, window_bounds = array<i64: 1, 256>}, {pipeline_mode = #tpu.pipeline_mode<synchronous>, transform_indices = @transform_9, window_bounds = array<i64: 256, 512>}, {pipeline_mode = #tpu.pipeline_mode<synchronous>, transform_indices = @transform_10, window_bounds = array<i64: 1, 512>}, {pipeline_mode = #tpu.pipeline_mode<synchronous>, transform_indices = @transform_11, window_bounds = array<i64: 1, 512>}, {pipeline_mode = #tpu.pipeline_mode<synchronous>, transform_indices = @transform_12, window_bounds = array<i64: 1, 512>}, {pipeline_mode = #tpu.pipeline_mode<synchronous>, transform_indices = @transform_13, window_bounds = array<i64: 512, 512>}, {pipeline_mode = #tpu.pipeline_mode<synchronous>, transform_indices = @transform_14, window_bounds = array<i64: 1, 512>}, {pipeline_mode = #tpu.pipeline_mode<synchronous>, transform_indices = @transform_15, window_bounds = array<i64: 512, 128>}, {pipeline_mode = #tpu.pipeline_mode<synchronous>, transform_indices = @transform_16, window_bounds = array<i64: 1, 128>}, {transform_indices = @transform_17, window_bounds = array<i64: 8, 128>}]} {
    %c0 = arith.constant 0 : index
    %c0_0 = arith.constant 0 : index
    %0 = vector.load %arg1[%c0, %c0_0] : memref<8x8xf32, #tpu.memory_space<vmem>>, vector<8x8xf32>
    %1 = arith.truncf %0 : vector<8x8xf32> to vector<8x8xbf16>
    %c0_1 = arith.constant 0 : index
    %c0_2 = arith.constant 0 : index
    %2 = vector.load %arg2[%c0_1, %c0_2] : memref<8x128xbf16, #tpu.memory_space<vmem>>, vector<8x128xbf16>
    %cst = arith.constant dense<0.000000e+00> : vector<8x128xf32>
    %3 = tpu.matmul %1, %2, %cst {dimension_numbers = #tpu.dot_dimension_numbers<[1], [0], [0], [1], [0, 0, 1, 1], [], []>} : vector<8x8xbf16>, vector<8x128xbf16>, vector<8x128xf32> -> vector<8x128xf32>
    %c0_3 = arith.constant 0 : index
    %c0_4 = arith.constant 0 : index
    %4 = vector.load %arg3[%c0_3, %c0_4] : memref<1x128xf32, #tpu.memory_space<vmem>>, vector<1x128xf32>
    %5 = vector.broadcast %4 : vector<1x128xf32> to vector<8x128xf32>
    %6 = arith.addf %3, %5 : vector<8x128xf32>
    %7 = arith.negf %6 : vector<8x128xf32>
    %8 = math.exp %7 : vector<8x128xf32>
    %cst_5 = arith.constant 1.000000e+00 : f32
    %9 = vector.broadcast %cst_5 : f32 to vector<8x128xf32>
    %10 = arith.addf %9, %8 : vector<8x128xf32>
    %11 = arith.divf %9, %10 : vector<8x128xf32>
    %12 = arith.mulf %6, %11 : vector<8x128xf32>
    %cst_6 = arith.constant dense<0.000000e+00> : vector<8xf32>
    %13 = vector.multi_reduction <add>, %12, %cst_6 [1] : vector<8x128xf32> to vector<8xf32>
    %14 = vector.shape_cast %13 : vector<8xf32> to vector<8x1xf32>
    %cst_7 = arith.constant 1.280000e+02 : f32
    %15 = vector.broadcast %cst_7 : f32 to vector<8x1xf32>
    %16 = arith.divf %14, %15 : vector<8x1xf32>
    %17 = vector.broadcast %16 : vector<8x1xf32> to vector<8x128xf32>
    %18 = arith.subf %12, %17 : vector<8x128xf32>
    %19 = arith.mulf %18, %18 : vector<8x128xf32>
    %cst_8 = arith.constant dense<0.000000e+00> : vector<8xf32>
    %20 = vector.multi_reduction <add>, %19, %cst_8 [1] : vector<8x128xf32> to vector<8xf32>
    %21 = vector.shape_cast %20 : vector<8xf32> to vector<8x1xf32>
    %cst_9 = arith.constant 1.280000e+02 : f32
    %22 = vector.broadcast %cst_9 : f32 to vector<8x1xf32>
    %23 = arith.divf %21, %22 : vector<8x1xf32>
    %cst_10 = arith.constant 9.99999974E-6 : f32
    %24 = vector.broadcast %cst_10 : f32 to vector<8x1xf32>
    %25 = arith.addf %23, %24 : vector<8x1xf32>
    %26 = math.rsqrt %25 : vector<8x1xf32>
    %27 = vector.broadcast %26 : vector<8x1xf32> to vector<8x128xf32>
    %28 = arith.mulf %18, %27 : vector<8x128xf32>
    %c0_11 = arith.constant 0 : index
    %c0_12 = arith.constant 0 : index
    %29 = vector.load %arg4[%c0_11, %c0_12] : memref<1x128xf32, #tpu.memory_space<vmem>>, vector<1x128xf32>
    %30 = vector.broadcast %29 : vector<1x128xf32> to vector<8x128xf32>
    %31 = arith.mulf %28, %30 : vector<8x128xf32>
    %c0_13 = arith.constant 0 : index
    %c0_14 = arith.constant 0 : index
    %32 = vector.load %arg5[%c0_13, %c0_14] : memref<1x128xf32, #tpu.memory_space<vmem>>, vector<1x128xf32>
    %33 = vector.broadcast %32 : vector<1x128xf32> to vector<8x128xf32>
    %34 = arith.addf %31, %33 : vector<8x128xf32>
    %35 = arith.truncf %34 : vector<8x128xf32> to vector<8x128xbf16>
    %c0_15 = arith.constant 0 : index
    %c0_16 = arith.constant 0 : index
    %36 = vector.load %arg6[%c0_15, %c0_16] : memref<128x256xbf16, #tpu.memory_space<vmem>>, vector<128x256xbf16>
    %cst_17 = arith.constant dense<0.000000e+00> : vector<8x256xf32>
    %37 = tpu.matmul %35, %36, %cst_17 {dimension_numbers = #tpu.dot_dimension_numbers<[1], [0], [0], [1], [0, 0, 1, 1], [], []>} : vector<8x128xbf16>, vector<128x256xbf16>, vector<8x256xf32> -> vector<8x256xf32>
    %c0_18 = arith.constant 0 : index
    %c0_19 = arith.constant 0 : index
    %38 = vector.load %arg7[%c0_18, %c0_19] : memref<1x256xf32, #tpu.memory_space<vmem>>, vector<1x256xf32>
    %39 = vector.broadcast %38 : vector<1x256xf32> to vector<8x256xf32>
    %40 = arith.addf %37, %39 : vector<8x256xf32>
    %41 = arith.negf %40 : vector<8x256xf32>
    %42 = math.exp %41 : vector<8x256xf32>
    %cst_20 = arith.constant 1.000000e+00 : f32
    %43 = vector.broadcast %cst_20 : f32 to vector<8x256xf32>
    %44 = arith.addf %43, %42 : vector<8x256xf32>
    %45 = arith.divf %43, %44 : vector<8x256xf32>
    %46 = arith.mulf %40, %45 : vector<8x256xf32>
    %cst_21 = arith.constant dense<0.000000e+00> : vector<8xf32>
    %47 = vector.multi_reduction <add>, %46, %cst_21 [1] : vector<8x256xf32> to vector<8xf32>
    %48 = vector.shape_cast %47 : vector<8xf32> to vector<8x1xf32>
    %cst_22 = arith.constant 2.560000e+02 : f32
    %49 = vector.broadcast %cst_22 : f32 to vector<8x1xf32>
    %50 = arith.divf %48, %49 : vector<8x1xf32>
    %51 = vector.broadcast %50 : vector<8x1xf32> to vector<8x256xf32>
    %52 = arith.subf %46, %51 : vector<8x256xf32>
    %53 = arith.mulf %52, %52 : vector<8x256xf32>
    %cst_23 = arith.constant dense<0.000000e+00> : vector<8xf32>
    %54 = vector.multi_reduction <add>, %53, %cst_23 [1] : vector<8x256xf32> to vector<8xf32>
    %55 = vector.shape_cast %54 : vector<8xf32> to vector<8x1xf32>
    %cst_24 = arith.constant 2.560000e+02 : f32
    %56 = vector.broadcast %cst_24 : f32 to vector<8x1xf32>
    %57 = arith.divf %55, %56 : vector<8x1xf32>
    %cst_25 = arith.constant 9.99999974E-6 : f32
    %58 = vector.broadcast %cst_25 : f32 to vector<8x1xf32>
    %59 = arith.addf %57, %58 : vector<8x1xf32>
    %60 = math.rsqrt %59 : vector<8x1xf32>
    %61 = vector.broadcast %60 : vector<8x1xf32> to vector<8x256xf32>
    %62 = arith.mulf %52, %61 : vector<8x256xf32>
    %c0_26 = arith.constant 0 : index
    %c0_27 = arith.constant 0 : index
    %63 = vector.load %arg8[%c0_26, %c0_27] : memref<1x256xf32, #tpu.memory_space<vmem>>, vector<1x256xf32>
    %64 = vector.broadcast %63 : vector<1x256xf32> to vector<8x256xf32>
    %65 = arith.mulf %62, %64 : vector<8x256xf32>
    %c0_28 = arith.constant 0 : index
    %c0_29 = arith.constant 0 : index
    %66 = vector.load %arg9[%c0_28, %c0_29] : memref<1x256xf32, #tpu.memory_space<vmem>>, vector<1x256xf32>
    %67 = vector.broadcast %66 : vector<1x256xf32> to vector<8x256xf32>
    %68 = arith.addf %65, %67 : vector<8x256xf32>
    %69 = arith.truncf %68 : vector<8x256xf32> to vector<8x256xbf16>
    %c0_30 = arith.constant 0 : index
    %c0_31 = arith.constant 0 : index
    %70 = vector.load %arg10[%c0_30, %c0_31] : memref<256x512xbf16, #tpu.memory_space<vmem>>, vector<256x512xbf16>
    %cst_32 = arith.constant dense<0.000000e+00> : vector<8x512xf32>
    %71 = tpu.matmul %69, %70, %cst_32 {dimension_numbers = #tpu.dot_dimension_numbers<[1], [0], [0], [1], [0, 0, 1, 1], [], []>} : vector<8x256xbf16>, vector<256x512xbf16>, vector<8x512xf32> -> vector<8x512xf32>
    %c0_33 = arith.constant 0 : index
    %c0_34 = arith.constant 0 : index
    %72 = vector.load %arg11[%c0_33, %c0_34] : memref<1x512xf32, #tpu.memory_space<vmem>>, vector<1x512xf32>
    %73 = vector.broadcast %72 : vector<1x512xf32> to vector<8x512xf32>
    %74 = arith.addf %71, %73 : vector<8x512xf32>
    %75 = arith.negf %74 : vector<8x512xf32>
    %76 = math.exp %75 : vector<8x512xf32>
    %cst_35 = arith.constant 1.000000e+00 : f32
    %77 = vector.broadcast %cst_35 : f32 to vector<8x512xf32>
    %78 = arith.addf %77, %76 : vector<8x512xf32>
    %79 = arith.divf %77, %78 : vector<8x512xf32>
    %80 = arith.mulf %74, %79 : vector<8x512xf32>
    %cst_36 = arith.constant dense<0.000000e+00> : vector<8xf32>
    %81 = vector.multi_reduction <add>, %80, %cst_36 [1] : vector<8x512xf32> to vector<8xf32>
    %82 = vector.shape_cast %81 : vector<8xf32> to vector<8x1xf32>
    %cst_37 = arith.constant 5.120000e+02 : f32
    %83 = vector.broadcast %cst_37 : f32 to vector<8x1xf32>
    %84 = arith.divf %82, %83 : vector<8x1xf32>
    %85 = vector.broadcast %84 : vector<8x1xf32> to vector<8x512xf32>
    %86 = arith.subf %80, %85 : vector<8x512xf32>
    %87 = arith.mulf %86, %86 : vector<8x512xf32>
    %cst_38 = arith.constant dense<0.000000e+00> : vector<8xf32>
    %88 = vector.multi_reduction <add>, %87, %cst_38 [1] : vector<8x512xf32> to vector<8xf32>
    %89 = vector.shape_cast %88 : vector<8xf32> to vector<8x1xf32>
    %cst_39 = arith.constant 5.120000e+02 : f32
    %90 = vector.broadcast %cst_39 : f32 to vector<8x1xf32>
    %91 = arith.divf %89, %90 : vector<8x1xf32>
    %cst_40 = arith.constant 9.99999974E-6 : f32
    %92 = vector.broadcast %cst_40 : f32 to vector<8x1xf32>
    %93 = arith.addf %91, %92 : vector<8x1xf32>
    %94 = math.rsqrt %93 : vector<8x1xf32>
    %95 = vector.broadcast %94 : vector<8x1xf32> to vector<8x512xf32>
    %96 = arith.mulf %86, %95 : vector<8x512xf32>
    %c0_41 = arith.constant 0 : index
    %c0_42 = arith.constant 0 : index
    %97 = vector.load %arg12[%c0_41, %c0_42] : memref<1x512xf32, #tpu.memory_space<vmem>>, vector<1x512xf32>
    %98 = vector.broadcast %97 : vector<1x512xf32> to vector<8x512xf32>
    %99 = arith.mulf %96, %98 : vector<8x512xf32>
    %c0_43 = arith.constant 0 : index
    %c0_44 = arith.constant 0 : index
    %100 = vector.load %arg13[%c0_43, %c0_44] : memref<1x512xf32, #tpu.memory_space<vmem>>, vector<1x512xf32>
    %101 = vector.broadcast %100 : vector<1x512xf32> to vector<8x512xf32>
    %102 = arith.addf %99, %101 : vector<8x512xf32>
    %103 = arith.truncf %102 : vector<8x512xf32> to vector<8x512xbf16>
    %c0_45 = arith.constant 0 : index
    %c0_46 = arith.constant 0 : index
    %104 = vector.load %arg14[%c0_45, %c0_46] : memref<512x512xbf16, #tpu.memory_space<vmem>>, vector<512x512xbf16>
    %cst_47 = arith.constant dense<0.000000e+00> : vector<8x512xf32>
    %105 = tpu.matmul %103, %104, %cst_47 {dimension_numbers = #tpu.dot_dimension_numbers<[1], [0], [0], [1], [0, 0, 1, 1], [], []>} : vector<8x512xbf16>, vector<512x512xbf16>, vector<8x512xf32> -> vector<8x512xf32>
    %c0_48 = arith.constant 0 : index
    %c0_49 = arith.constant 0 : index
    %106 = vector.load %arg15[%c0_48, %c0_49] : memref<1x512xf32, #tpu.memory_space<vmem>>, vector<1x512xf32>
    %107 = vector.broadcast %106 : vector<1x512xf32> to vector<8x512xf32>
    %108 = arith.addf %105, %107 : vector<8x512xf32>
    %109 = arith.negf %108 : vector<8x512xf32>
    %110 = math.exp %109 : vector<8x512xf32>
    %cst_50 = arith.constant 1.000000e+00 : f32
    %111 = vector.broadcast %cst_50 : f32 to vector<8x512xf32>
    %112 = arith.addf %111, %110 : vector<8x512xf32>
    %113 = arith.divf %111, %112 : vector<8x512xf32>
    %114 = arith.mulf %108, %113 : vector<8x512xf32>
    %115 = arith.truncf %114 : vector<8x512xf32> to vector<8x512xbf16>
    %c0_51 = arith.constant 0 : index
    %c0_52 = arith.constant 0 : index
    %116 = vector.load %arg16[%c0_51, %c0_52] : memref<512x128xbf16, #tpu.memory_space<vmem>>, vector<512x128xbf16>
    %cst_53 = arith.constant dense<0.000000e+00> : vector<8x128xf32>
    %117 = tpu.matmul %115, %116, %cst_53 {dimension_numbers = #tpu.dot_dimension_numbers<[1], [0], [0], [1], [0, 0, 1, 1], [], []>} : vector<8x512xbf16>, vector<512x128xbf16>, vector<8x128xf32> -> vector<8x128xf32>
    %c0_54 = arith.constant 0 : index
    %c0_55 = arith.constant 0 : index
    %118 = vector.load %arg17[%c0_54, %c0_55] : memref<1x128xf32, #tpu.memory_space<vmem>>, vector<1x128xf32>
    %119 = vector.broadcast %118 : vector<1x128xf32> to vector<8x128xf32>
    %120 = arith.addf %117, %119 : vector<8x128xf32>
    %121 = arith.truncf %120 : vector<8x128xf32> to vector<8x128xbf16>
    %c0_56 = arith.constant 0 : index
    %c0_57 = arith.constant 0 : index
    %122 = vector.load %arg18[%c0_56, %c0_57] : memref<8x128xbf16, #tpu.memory_space<vmem>>, vector<8x128xbf16>
    tpu.vector_store %arg18[%c0_56, %c0_57], %121 {strides = array<i32>} : memref<8x128xbf16, #tpu.memory_space<vmem>>, vector<8x128xbf16>,
    return
  }
  func.func @transform_0(%arg0: i32) -> (i32, i32) {
    %c0_i32 = arith.constant 0 : i32
    %c0_i32_0 = arith.constant 0 : i32
    return %arg0, %c0_i32 : i32, i32
  }
  func.func @transform_1(%arg0: i32) -> (i32, i32) {
    %c0_i32 = arith.constant 0 : i32
    %c0_i32_0 = arith.constant 0 : i32
    %c0_i32_1 = arith.constant 0 : i32
    return %c0_i32, %c0_i32_0 : i32, i32
  }
  func.func @transform_2(%arg0: i32) -> (i32, i32) {
    %c0_i32 = arith.constant 0 : i32
    %c0_i32_0 = arith.constant 0 : i32
    %c0_i32_1 = arith.constant 0 : i32
    return %c0_i32, %c0_i32_0 : i32, i32
  }
  func.func @transform_3(%arg0: i32) -> (i32, i32) {
    %c0_i32 = arith.constant 0 : i32
    %c0_i32_0 = arith.constant 0 : i32
    %c0_i32_1 = arith.constant 0 : i32
    return %c0_i32, %c0_i32_0 : i32, i32
  }
  func.func @transform_4(%arg0: i32) -> (i32, i32) {
    %c0_i32 = arith.constant 0 : i32
    %c0_i32_0 = arith.constant 0 : i32
    %c0_i32_1 = arith.constant 0 : i32
    return %c0_i32, %c0_i32_0 : i32, i32
  }
  func.func @transform_5(%arg0: i32) -> (i32, i32) {
    %c0_i32 = arith.constant 0 : i32
    %c0_i32_0 = arith.constant 0 : i32
    %c0_i32_1 = arith.constant 0 : i32
    return %c0_i32, %c0_i32_0 : i32, i32
  }
  func.func @transform_6(%arg0: i32) -> (i32, i32) {
    %c0_i32 = arith.constant 0 : i32
    %c0_i32_0 = arith.constant 0 : i32
    %c0_i32_1 = arith.constant 0 : i32
    return %c0_i32, %c0_i32_0 : i32, i32
  }
  func.func @transform_7(%arg0: i32) -> (i32, i32) {
    %c0_i32 = arith.constant 0 : i32
    %c0_i32_0 = arith.constant 0 : i32
    %c0_i32_1 = arith.constant 0 : i32
    return %c0_i32, %c0_i32_0 : i32, i32
  }
  func.func @transform_8(%arg0: i32) -> (i32, i32) {
    %c0_i32 = arith.constant 0 : i32
    %c0_i32_0 = arith.constant 0 : i32
    %c0_i32_1 = arith.constant 0 : i32
    return %c0_i32, %c0_i32_0 : i32, i32
  }
  func.func @transform_9(%arg0: i32) -> (i32, i32) {
    %c0_i32 = arith.constant 0 : i32
    %c0_i32_0 = arith.constant 0 : i32
    %c0_i32_1 = arith.constant 0 : i32
    return %c0_i32, %c0_i32_0 : i32, i32
  }
  func.func @transform_10(%arg0: i32) -> (i32, i32) {
    %c0_i32 = arith.constant 0 : i32
    %c0_i32_0 = arith.constant 0 : i32
    %c0_i32_1 = arith.constant 0 : i32
    return %c0_i32, %c0_i32_0 : i32, i32
  }
  func.func @transform_11(%arg0: i32) -> (i32, i32) {
    %c0_i32 = arith.constant 0 : i32
    %c0_i32_0 = arith.constant 0 : i32
    %c0_i32_1 = arith.constant 0 : i32
    return %c0_i32, %c0_i32_0 : i32, i32
  }
  func.func @transform_12(%arg0: i32) -> (i32, i32) {
    %c0_i32 = arith.constant 0 : i32
    %c0_i32_0 = arith.constant 0 : i32
    %c0_i32_1 = arith.constant 0 : i32
    return %c0_i32, %c0_i32_0 : i32, i32
  }
  func.func @transform_13(%arg0: i32) -> (i32, i32) {
    %c0_i32 = arith.constant 0 : i32
    %c0_i32_0 = arith.constant 0 : i32
    %c0_i32_1 = arith.constant 0 : i32
    return %c0_i32, %c0_i32_0 : i32, i32
  }
  func.func @transform_14(%arg0: i32) -> (i32, i32) {
    %c0_i32 = arith.constant 0 : i32
    %c0_i32_0 = arith.constant 0 : i32
    %c0_i32_1 = arith.constant 0 : i32
    return %c0_i32, %c0_i32_0 : i32, i32
  }
  func.func @transform_15(%arg0: i32) -> (i32, i32) {
    %c0_i32 = arith.constant 0 : i32
    %c0_i32_0 = arith.constant 0 : i32
    %c0_i32_1 = arith.constant 0 : i32
    return %c0_i32, %c0_i32_0 : i32, i32
  }
  func.func @transform_16(%arg0: i32) -> (i32, i32) {
    %c0_i32 = arith.constant 0 : i32
    %c0_i32_0 = arith.constant 0 : i32
    %c0_i32_1 = arith.constant 0 : i32
    return %c0_i32, %c0_i32_0 : i32, i32
  }
  func.func @transform_17(%arg0: i32) -> (i32, i32) {
    %c0_i32 = arith.constant 0 : i32
    %c0_i32_0 = arith.constant 0 : i32
    return %arg0, %c0_i32 : i32, i32
  }
}

</mosaic_0001>

<bundles_post_ra>
// kernel: tpu_custom_call.1
= control target key start
LH: loop header
LB: loop body
LE: loop exit
PB: predicated region body
PF: predicated region fallthrough
CT: control target
= control target key end

     0   :  { %6 = vsyncpa [#allocation3], 0  ;;  %s125_s0 = inlined_call_operand.hbm [shape: f32[8,128], index: 0, kind: input, shape index: {}]   ;;  %s126_s1 = inlined_call_operand.hbm [shape: f32[8,128], index: 1, kind: output, shape index: {}]  }
   0x1   :  { %7 = vsyncpa [#allocation4], 0  ;;  %s89_s6 = smov [#allocation2]   ;;  %s41_s10 = scalar_lea.hbm %s125_s0, 128 }
   0x2   :  { %s14_s7 = sshll.u32 %s89_s6, 4  ;;  %p42_p0 = scmp.ne.s32.totalorder %s125_s0, %s41_s10  ;;  %s15_s7 = int_to_ptr.vmem [resolvable:$true] %s14_s7 }
   0x3   :  { %p45_p1 = scmp.lt.u32.totalorder %s41_s10, %s125_s0 }
   0x5   :  { %p47_p2 = pnand %p45_p1, %p42_p0 }
   0x7   :  { %50 = shalt.err (!%p47_p2)
}
   0x8   :  { %s51_s15 = scalar_lea.vmem %s15_s7, 128  ;;  %p56_p4 = scmp.lt.s32.totalorder %s15_s7, %s15_s7 }
   0x9   :  { %p52_p3 = scmp.ne.s32.totalorder %s15_s7, %s51_s15  ;;  %p57_p5 = scmp.lt.s32.totalorder %s51_s15, %s51_s15 }
   0xb   :  { %p58_p6 = por %p57_p5, %p56_p4 }
   0xd   :  { %p59_p7 = pnand %p58_p6, %p52_p3 }
   0xf   :  { %62 = shalt.err (!%p59_p7)
}
  0x10   :  { %17 = dma.hbm_to_vmem [thread:$0]  %s125_s0, 128, %s15_s7, [#allocation3]  }
  0x11   :  { %85 = dma.done.wait [#allocation3], 128  }
  0x12   :  { %86 = vsyncadd [#allocation3], 4294967168  ;;  %s90_s18 = smov [#allocation5]   ;;  %v21_v0 = vld [vmem:[#allocation2] sm:$0xff] }
  0x13   :  { %s30_s19 = sshll.u32 %s90_s18, 4  ;;  %v22_v1 = vadd.f32 1.0, %v21_v0  ;;  %s31_s19 = int_to_ptr.vmem [resolvable:$true] %s30_s19 }
  0x14   :  { %s63_s20 = scalar_lea.vmem %s31_s19, 128  ;;  %p68_p9 = scmp.lt.s32.totalorder %s31_s19, %s31_s19 }
  0x15   :  { %23 = vst [vmem:[#allocation5] sm:$0xff] %v22_v1  ;;  %p64_p8 = scmp.ne.s32.totalorder %s31_s19, %s63_s20  ;;  %p69_p10 = scmp.lt.s32.totalorder %s63_s20, %s63_s20 }
  0x17   :  { %p70_p11 = por %p69_p10, %p68_p9 }
  0x19   :  { %p71_p12 = pnand %p70_p11, %p64_p8 }
  0x1b   :  { %74 = shalt.err (!%p71_p12)
}
  0x1c   :  { %s75_s23 = scalar_lea.hbm %s126_s1, 128 }
  0x1d   :  { %p76_p13 = scmp.ne.s32.totalorder %s126_s1, %s75_s23  ;;  %p79_p0 = scmp.lt.u32.totalorder %s75_s23, %s126_s1 }
  0x1f   :  { %p81_p1 = pnand %p79_p0, %p76_p13 }
  0x21   :  { %84 = shalt.err (!%p81_p1)
}
  0x22   :  { %33 = dma.vmem_to_hbm [thread:$0]  %s31_s19, 128, %s126_s1, [#allocation4]  }
  0x23   :  { %87 = dma.done.wait [#allocation4], 128  }
  0x24   :  { %88 = vsyncadd [#allocation4], 4294967168 }
  0x25   :  { %37 = vsyncpa [#allocation3], 1 }
  0x26   :  { %38 = vsyncpa [#allocation4], 1 }

// kernel: tpu_custom_call.1
= control target key start
LH: loop header
LB: loop body
LE: loop exit
PB: predicated region body
PF: predicated region fallthrough
CT: control target
= control target key end

     0   :  { %s3736_s0 = inlined_call_operand.hbm [shape: f32[8,8], index: 0, kind: input, shape index: {}]   ;;  %s3737_s1 = inlined_call_operand.hbm [shape: bf16[8,128], index: 1, kind: input, shape index: {}]   ;;  %s3738_s2 = inlined_call_operand.hbm [shape: f32[1,128], index: 2, kind: input, shape index: {}]   ;;  %s3739_s3 = inlined_call_operand.hbm [shape: f32[1,128], index: 3, kind: input, shape index: {}]   ;;  %s3740_s4 = inlined_call_operand.hbm [shape: f32[1,128], index: 4, kind: input, shape index: {}]   ;;  %s3741_s5 = inlined_call_operand.hbm [shape: bf16[128,256], index: 5, kind: input, shape index: {}]   ;;  %s3742_s6 = inlined_call_operand.vmem [shape: f32[1,256], index: 6, kind: input, shape index: {}]   ;;  %s3743_s7 = inlined_call_operand.vmem [shape: f32[1,256], index: 7, kind: input, shape index: {}]   ;;  %s3744_s8 = inlined_call_operand.vmem [shape: f32[1,256], index: 8, kind: input, shape index: {}]   ;;  %s3745_s9 = inlined_call_operand.hbm [shape: bf16[256,512], index: 9, kind: input, shape index: {}]   ;;  %s3746_s10 = inlined_call_operand.vmem [shape: f32[1,512], index: 10, kind: input, shape index: {}]   ;;  %s3747_s11 = inlined_call_operand.vmem [shape: f32[1,512], index: 11, kind: input, shape index: {}]   ;;  %s3748_s12 = inlined_call_operand.vmem [shape: f32[1,512], index: 12, kind: input, shape index: {}]   ;;  %s3749_s13 = inlined_call_operand.hbm [shape: bf16[512,512], index: 13, kind: input, shape index: {}]   ;;  %s3750_s14 = inlined_call_operand.vmem [shape: f32[1,512], index: 14, kind: input, shape index: {}]   ;;  %s3751_s15 = inlined_call_operand.hbm [shape: bf16[512,128], index: 15, kind: input, shape index: {}]   ;;  %s3752_s16 = inlined_call_operand.vmem [shape: f32[1,128], index: 16, kind: input, shape index: {}]   ;;  %s3753_s17 = inlined_call_operand.hbm [shape: bf16[8,128], index: 17, kind: output, shape index: {}]  }
   0x1   :  { %3756 = sst [smem:[#allocation24_spill]] %s3736_s0 }
   0x2   :  { %3757 = sst [smem:[#allocation25_spill]] %s3737_s1 }
   0x3   :  { %22 = vsyncpa [#allocation3], 0 }
   0x4   :  { %23 = vsyncpa [#allocation6], 0 }
   0x5   :  { %24 = vsyncpa [#allocation9], 0 }
   0x6   :  { %25 = vsyncpa [#allocation12], 0 }
   0x7   :  { %26 = vsyncpa [#allocation15], 0 }
   0x8   :  { %27 = vsyncpa [#allocation4], 0  ;;  %s3388_s24 = smov [#allocation5]   ;;  %s3389_s26 = smov [#allocation8]  }
   0x9   :  { %s44_s25 = sshll.u32 %s3388_s24, 4  ;;  %s64_s27 = sshll.u32 %s3389_s26, 4  ;;  %s45_s25 = int_to_ptr.vmem [resolvable:$true] %s44_s25  ;;  %s65_s27 = int_to_ptr.vmem [resolvable:$true] %s64_s27 }
   0xa   :  { %s3758_s0 = sld [smem:[#allocation25_spill]] }
  0x10   :  { %s3156_s30 = scalar_lea.hbm %s3758_s0, 64 }
  0x11   :  { %p3157_p0 = scmp.ne.s32.totalorder %s3758_s0, %s3156_s30  ;;  %p3160_p1 = scmp.lt.u32.totalorder %s3156_s30, %s3758_s0 }
  0x13   :  { %p3162_p2 = pnand %p3160_p1, %p3157_p0 }
  0x15   :  { %3165 = shalt.err (!%p3162_p2)
}
  0x16   :  { %s3166_s21 = scalar_lea.vmem %s45_s25, 64  ;;  %p3171_p4 = scmp.lt.s32.totalorder %s45_s25, %s45_s25 }
  0x17   :  { %p3167_p3 = scmp.ne.s32.totalorder %s45_s25, %s3166_s21  ;;  %p3172_p5 = scmp.lt.s32.totalorder %s3166_s21, %s3166_s21 }
  0x19   :  { %p3173_p6 = por %p3172_p5, %p3171_p4 }
  0x1b   :  { %p3174_p7 = pnand %p3173_p6, %p3167_p3 }
  0x1d   :  { %3177 = shalt.err (!%p3174_p7)
}
  0x1e   :  { %47 = dma.hbm_to_vmem [thread:$0]  %s3758_s0, 64, %s45_s25, [#allocation6]  }
  0x1f   :  { %s3178_s28 = scalar_lea.hbm %s3739_s3, 16 }
  0x20   :  { %p3179_p8 = scmp.ne.s32.totalorder %s3739_s3, %s3178_s28  ;;  %p3182_p9 = scmp.lt.u32.totalorder %s3178_s28, %s3739_s3 }
  0x22   :  { %p3184_p10 = pnand %p3182_p9, %p3179_p8 }
  0x24   :  { %3187 = shalt.err (!%p3184_p10)
}
  0x25   :  { %s3188_s1 = scalar_lea.vmem %s65_s27, 16  ;;  %s3192_s20 = scalar_lea.vmem %s65_s27, 32 }
  0x26   :  { %p3189_p11 = scmp.ne.s32.totalorder %s65_s27, %s3188_s1  ;;  %p3193_p12 = scmp.lt.s32.totalorder %s65_s27, %s65_s27 }
  0x27   :  { %p3194_p13 = scmp.lt.s32.totalorder %s3192_s20, %s3188_s1 }
  0x29   :  { %p3195_p0 = por %p3194_p13, %p3193_p12 }
  0x2b   :  { %p3196_p1 = pnand %p3195_p0, %p3189_p11 }
  0x2d   :  { %3199 = shalt.err (!%p3196_p1)
}
  0x2e   :  { %67 = dma.hbm_to_vmem [thread:$0]  %s3739_s3, 16, %s65_s27, [#allocation9]  }
  0x2f   :  { %s3390_s21 = smov [#allocation11]   ;;  %s3200_s26 = scalar_lea.hbm %s3741_s5, 2048 }
  0x30   :  { %s83_s22 = sshll.u32 %s3390_s21, 4  ;;  %p3201_p2 = scmp.ne.s32.totalorder %s3741_s5, %s3200_s26  ;;  %s84_s22 = int_to_ptr.vmem [resolvable:$true] %s83_s22 }
  0x31   :  { %p3204_p3 = scmp.lt.u32.totalorder %s3200_s26, %s3741_s5 }
  0x33   :  { %p3206_p4 = pnand %p3204_p3, %p3201_p2 }
  0x35   :  { %3209 = shalt.err (!%p3206_p4)
}
  0x36   :  { %s3210_s19 = scalar_lea.vmem %s84_s22, 2048  ;;  %p3215_p6 = scmp.lt.s32.totalorder %s84_s22, %s84_s22 }
  0x37   :  { %p3211_p5 = scmp.ne.s32.totalorder %s84_s22, %s3210_s19  ;;  %p3216_p7 = scmp.lt.s32.totalorder %s3210_s19, %s3210_s19 }
  0x39   :  { %p3217_p8 = por %p3216_p7, %p3215_p6 }
  0x3b   :  { %p3218_p9 = pnand %p3217_p8, %p3211_p5 }
  0x3d   :  { %3221 = shalt.err (!%p3218_p9)
}
  0x3e   :  { %s3391_s3 = smov 128   ;;  %s3392_s27 = smov 8  }
  0x3f   :  { %89 = dma.hbm_to_vmem [thread:$0]  %s3741_s5, 2048, %s84_s22, [#allocation12], %s3391_s3, %s3391_s3, %s3392_s27  }
  0x40   :  { %s3393_s25 = smov [#allocation14]   ;;  %s3394_s21 = smov [#allocation2]  }
  0x41   :  { %s119_s0 = sshll.u32 %s3393_s25, 4  ;;  %s34_s23 = sshll.u32 %s3394_s21, 4  ;;  %s120_s0 = int_to_ptr.vmem [resolvable:$true] %s119_s0  ;;  %s35_s23 = int_to_ptr.vmem [resolvable:$true] %s34_s23 }
  0x42   :  { %s3222_s28 = scalar_lea.hbm %s3749_s13, 16384 }
  0x43   :  { %p3223_p10 = scmp.ne.s32.totalorder %s3749_s13, %s3222_s28  ;;  %p3226_p11 = scmp.lt.u32.totalorder %s3222_s28, %s3749_s13 }
  0x45   :  { %p3228_p12 = pnand %p3226_p11, %p3223_p10 }
  0x47   :  { %3231 = shalt.err (!%p3228_p12)
}
  0x48   :  { %s3232_s5 = scalar_lea.vmem %s120_s0, 16384  ;;  %p3237_p0 = scmp.lt.s32.totalorder %s120_s0, %s120_s0 }
  0x49   :  { %p3233_p13 = scmp.ne.s32.totalorder %s120_s0, %s3232_s5  ;;  %p3238_p1 = scmp.lt.s32.totalorder %s3232_s5, %s3232_s5 }
  0x4b   :  { %p3239_p2 = por %p3238_p1, %p3237_p0 }
  0x4d   :  { %p3240_p3 = pnand %p3239_p2, %p3233_p13 }
  0x4f   :  { %3243 = shalt.err (!%p3240_p3)
}
  0x50   :  { %s3395_s22 = smov 256   ;;  %s3396_s3 = smov 16  }
  0x51   :  { %125 = dma.hbm_to_vmem [thread:$0]  %s3749_s13, 16384, %s120_s0, [#allocation15], %s3395_s22, %s3395_s22, %s3396_s3  }
  0x52   :  { %s3759_s21 = sld [smem:[#allocation24_spill]] }
  0x58   :  { %s3244_s24 = scalar_lea.hbm %s3759_s21, 128 }
  0x59   :  { %p3245_p4 = scmp.ne.s32.totalorder %s3759_s21, %s3244_s24  ;;  %p3248_p5 = scmp.lt.u32.totalorder %s3244_s24, %s3759_s21 }
  0x5b   :  { %p3250_p6 = pnand %p3248_p5, %p3245_p4 }
  0x5d   :  { %3253 = shalt.err (!%p3250_p6)
}
  0x5e   :  { %s3254_s30 = scalar_lea.vmem %s35_s23, 128  ;;  %p3259_p8 = scmp.lt.s32.totalorder %s35_s23, %s35_s23 }
  0x5f   :  { %p3255_p7 = scmp.ne.s32.totalorder %s35_s23, %s3254_s30  ;;  %p3260_p9 = scmp.lt.s32.totalorder %s3254_s30, %s3254_s30 }
  0x61   :  { %p3261_p10 = por %p3260_p9, %p3259_p8 }
  0x63   :  { %p3262_p11 = pnand %p3261_p10, %p3255_p7 }
  0x65   :  { %3265 = shalt.err (!%p3262_p11)
}
  0x66   :  { %37 = dma.hbm_to_vmem [thread:$0]  %s3759_s21, 128, %s35_s23, [#allocation3]  }
  0x67   :  { %s3397_s19 = smov [#allocation7]   ;;  %s3398_s27 = smov [#allocation10]  }
  0x68   :  { %s54_s5 = sshll.u32 %s3397_s19, 4  ;;  %s74_s1 = sshll.u32 %s3398_s27, 4  ;;  %s55_s5 = int_to_ptr.vmem [resolvable:$true] %s54_s5  ;;  %s75_s1 = int_to_ptr.vmem [resolvable:$true] %s74_s1 }
  0x69   :  { %s3266_s24 = scalar_lea.hbm %s3738_s2, 16 }
  0x6a   :  { %p3267_p12 = scmp.ne.s32.totalorder %s3738_s2, %s3266_s24  ;;  %p3270_p13 = scmp.lt.u32.totalorder %s3266_s24, %s3738_s2 }
  0x6c   :  { %p3272_p0 = pnand %p3270_p13, %p3267_p12 }
  0x6e   :  { %3275 = shalt.err (!%p3272_p0)
}
  0x6f   :  { %s3276_s23 = scalar_lea.vmem %s55_s5, 16  ;;  %s3280_s21 = scalar_lea.vmem %s55_s5, 32 }
  0x70   :  { %p3277_p1 = scmp.ne.s32.totalorder %s55_s5, %s3276_s23  ;;  %p3281_p2 = scmp.lt.s32.totalorder %s55_s5, %s55_s5 }
  0x71   :  { %p3282_p3 = scmp.lt.s32.totalorder %s3280_s21, %s3276_s23 }
  0x73   :  { %p3283_p4 = por %p3282_p3, %p3281_p2 }
  0x75   :  { %p3284_p5 = pnand %p3283_p4, %p3277_p1 }
  0x77   :  { %3287 = shalt.err (!%p3284_p5)
}
  0x78   :  { %57 = dma.hbm_to_vmem [thread:$0]  %s3738_s2, 16, %s55_s5, [#allocation6]  }
  0x79   :  { %s3288_s27 = scalar_lea.hbm %s3740_s4, 16 }
  0x7a   :  { %p3289_p6 = scmp.ne.s32.totalorder %s3740_s4, %s3288_s27  ;;  %p3292_p7 = scmp.lt.u32.totalorder %s3288_s27, %s3740_s4 }
  0x7c   :  { %p3294_p8 = pnand %p3292_p7, %p3289_p6 }
  0x7e   :  { %3297 = shalt.err (!%p3294_p8)
}
  0x7f   :  { %s3298_s28 = scalar_lea.vmem %s75_s1, 16  ;;  %s3302_s29 = scalar_lea.vmem %s75_s1, 32 }
  0x80   :  { %p3299_p9 = scmp.ne.s32.totalorder %s75_s1, %s3298_s28  ;;  %p3303_p10 = scmp.lt.s32.totalorder %s75_s1, %s75_s1 }
  0x81   :  { %p3304_p11 = scmp.lt.s32.totalorder %s3302_s29, %s3298_s28 }
  0x83   :  { %p3305_p12 = por %p3304_p11, %p3303_p10 }
  0x85   :  { %p3306_p13 = pnand %p3305_p12, %p3299_p9 }
  0x87   :  { %3309 = shalt.err (!%p3306_p13)
}
  0x88   :  { %77 = dma.hbm_to_vmem [thread:$0]  %s3740_s4, 16, %s75_s1, [#allocation9]  }
  0x89   :  { %s3399_s18 = smov [#allocation13]   ;;  %s3400_s21 = smov [#allocation16]  }
  0x8a   :  { %s101_s23 = sshll.u32 %s3399_s18, 4  ;;  %s133_s30 = sshll.u32 %s3400_s21, 4  ;;  %s102_s23 = int_to_ptr.vmem [resolvable:$true] %s101_s23  ;;  %s134_s30 = int_to_ptr.vmem [resolvable:$true] %s133_s30 }
  0x8b   :  { %s3310_s19 = scalar_lea.hbm %s3745_s9, 8192 }
  0x8c   :  { %p3311_p0 = scmp.ne.s32.totalorder %s3745_s9, %s3310_s19  ;;  %p3314_p1 = scmp.lt.u32.totalorder %s3310_s19, %s3745_s9 }
  0x8e   :  { %p3316_p2 = pnand %p3314_p1, %p3311_p0 }
  0x90   :  { %3319 = shalt.err (!%p3316_p2)
}
  0x91   :  { %s3320_s4 = scalar_lea.vmem %s102_s23, 8192  ;;  %p3325_p4 = scmp.lt.s32.totalorder %s102_s23, %s102_s23 }
  0x92   :  { %p3321_p3 = scmp.ne.s32.totalorder %s102_s23, %s3320_s4  ;;  %p3326_p5 = scmp.lt.s32.totalorder %s3320_s4, %s3320_s4 }
  0x94   :  { %p3327_p6 = por %p3326_p5, %p3325_p4 }
  0x96   :  { %p3328_p7 = pnand %p3327_p6, %p3321_p3 }
  0x98   :  { %3331 = shalt.err (!%p3328_p7)
}
  0x99   :  { %107 = dma.hbm_to_vmem [thread:$0]  %s3745_s9, 8192, %s102_s23, [#allocation12], %s3395_s22, %s3395_s22, %s3396_s3  }
  0x9a   :  { %s3332_s2 = scalar_lea.hbm %s3751_s15, 4096 }
  0x9b   :  { %p3333_p8 = scmp.ne.s32.totalorder %s3751_s15, %s3332_s2  ;;  %p3336_p9 = scmp.lt.u32.totalorder %s3332_s2, %s3751_s15 }
  0x9d   :  { %p3338_p10 = pnand %p3336_p9, %p3333_p8 }
  0x9f   :  { %3341 = shalt.err (!%p3338_p10)
}
  0xa0   :  { %s3342_s0 = scalar_lea.vmem %s134_s30, 4096  ;;  %p3347_p12 = scmp.lt.s32.totalorder %s134_s30, %s134_s30 }
  0xa1   :  { %p3343_p11 = scmp.ne.s32.totalorder %s134_s30, %s3342_s0  ;;  %p3348_p13 = scmp.lt.s32.totalorder %s3342_s0, %s3342_s0 }
  0xa3   :  { %p3349_p0 = por %p3348_p13, %p3347_p12 }
  0xa5   :  { %p3350_p1 = pnand %p3349_p0, %p3343_p11 }
  0xa7   :  { %3353 = shalt.err (!%p3350_p1)
}
  0xa8   :  { %s3401_s9 = smov 64   ;;  %s3402_s22 = smov 4  }
  0xa9   :  { %139 = dma.hbm_to_vmem [thread:$0]  %s3751_s15, 4096, %s134_s30, [#allocation15], %s3401_s9, %s3401_s9, %s3402_s22  }
  0xaa   :  { %3376 = dma.done.wait [#allocation3], 128  }
  0xab   :  { %3377 = vsyncadd [#allocation3], 4294967168 }
  0xac   :  { %3378 = dma.done.wait [#allocation6], 80  }
  0xad   :  { %3379 = vsyncadd [#allocation6], 4294967216 }
  0xae   :  { %3380 = dma.done.wait [#allocation9], 32  }
  0xaf   :  { %3381 = vsyncadd [#allocation9], 4294967264 }
  0xb0   :  { %3382 = dma.done.wait [#allocation12], 10240  }
  0xb1   :  { %3383 = vsyncadd [#allocation12], 4294957056 }
  0xb2   :  { %3384 = dma.done.wait [#allocation15], 20480  }
  0xb3   :  { %3385 = vsyncadd [#allocation15], 4294946816  ;;  %v3403_v0 = vmov 0.0   ;;  %vm3404_vm0 = vmmov 0   ;;  %vm184_vm1 = vcmask 1043456   ;;  %v170_v2 = vld [vmem:[#allocation2] sm:$0xff]  ;;  %v282_v47 = vlaneseq }
  0xb4   :  { %2725 = vmatprep.subr.bf16.mxu0 %v3403_v0  ;;  %2727 = vmatprep.mubr.msk.bf16.mxu0 %vm3404_vm0, %v3403_v0  ;;  %v172_v1 = vld [vmem:[#allocation5] sm:$0xf]  ;;  %v171_v4 = vpack.c.bf16 %v170_v2, %v170_v2  ;;  %vm180_vm2 = vcmask 64512   ;;  %v2423_v5 = vld [vmem:[#allocation7] ss:$0 sm:$0xff]  ;;  %v3405_v31 = vmov 0  }
  0xb5   :  { %v186_v3 = vsel %vm184_vm1, %v172_v1, 0  ;;  %v2762_v16 = vld [vmem:[#allocation11 + $0x4] ss:$8 sps:$4 sm:$0xff]   ;;  %v2764_v17 = vld [vmem:[#allocation11] ss:$8 sps:$4 sm:$0xff]   ;;  %404 = vmatprep.mubr.bf16.mxu1 %v3405_v31  ;;  %v3611_v48 = vshrl.u32 %v282_v47, 7 }
  0xb6   :  { %2726 = vmatpush3.bf16.msra.mxu0 %v186_v3  ;;  %v2765_v18 = vld [vmem:[#allocation11 + $0x14] ss:$8 sps:$4 sm:$0xff]   ;;  %372 = vmatprep.subr.bf16.mxu1 %v2762_v16  ;;  %v2767_v19 = vld [vmem:[#allocation11 + $0x10] ss:$8 sps:$4 sm:$0xff]   ;;  %v2768_v20 = vld [vmem:[#allocation11 + $0x24] ss:$8 sps:$4 sm:$0xff]  }
  0xb7   :  { %373 = vmatpush1.bf16.msra.mxu1 %v2764_v17  ;;  %v2770_v25 = vld [vmem:[#allocation11 + $0x20] ss:$8 sps:$4 sm:$0xff]   ;;  %v2771_v26 = vld [vmem:[#allocation11 + $0x34] ss:$8 sps:$4 sm:$0xff]   ;;  %v2773_v27 = vld [vmem:[#allocation11 + $0x30] ss:$8 sps:$4 sm:$0xff]  }
  0xb8   :  { %374 = vmatprep.subr.bf16.mxu1 %v2765_v18  ;;  %v2774_v28 = vld [vmem:[#allocation11 + $0x44] ss:$8 sps:$4 sm:$0xff]   ;;  %v2776_v29 = vld [vmem:[#allocation11 + $0x40] ss:$8 sps:$4 sm:$0xff]   ;;  %v2777_v30 = vld [vmem:[#allocation11 + $0x54] ss:$8 sps:$4 sm:$0xff]  }
  0xb9   :  { %2728 = vmatmul.mubr.msk.bf16.vlgmr.msra.gmra.mrb[0].mxu0 %vm180_vm2, %v171_v4  ;;  %v2779_v32 = vld [vmem:[#allocation11 + $0x50] ss:$8 sps:$4 sm:$0xff]   ;;  %v2780_v33 = vld [vmem:[#allocation11 + $0x64] ss:$8 sps:$4 sm:$0xff]   ;;  %v2782_v34 = vld [vmem:[#allocation11 + $0x60] ss:$8 sps:$4 sm:$0xff]  }
  0xba   :  { %v2783_v35 = vld [vmem:[#allocation11 + $0x74] ss:$8 sps:$4 sm:$0xff]   ;;  %v2785_v36 = vld [vmem:[#allocation11 + $0x70] ss:$8 sps:$4 sm:$0xff]   ;;  %v3614_v49 = vsub.s32 0, %v3611_v48  ;;  %v3620_v51 = vsub.s32 1, %v3611_v48 }
  0xbb   :  { %375 = vmatpush1.bf16.msra.mxu1 %v2767_v19  ;;  %v2426_v41 = vld [vmem:[#allocation8] ss:$0 sm:$0xff]  ;;  %v2427_v43 = vld [vmem:[#allocation10] ss:$0 sm:$0xff]  ;;  %v280_v50 = vld [vmem:[%s3742_s6] sm:$0x3] }
  0xbc   :  { %376 = vmatprep.subr.bf16.mxu1 %v2768_v20  ;;  %v285_v52 = vrot.slane %v280_v50, %v3614_v49  ;;  %v289_v53 = vrot.slane %v280_v50, %v3620_v51  ;;  %v2803_v16 = vld [vmem:[#allocation13 + $0x4c] ss:$16 sps:$4 sm:$0xff]   ;;  %v2798_v17 = vld [vmem:[#allocation13 + $0x40] ss:$16 sps:$4 sm:$0xff]   ;;  %v2801_v18 = vld [vmem:[#allocation13 + $0x48] ss:$16 sps:$4 sm:$0xff]  }
  0xbd   :  { %v2806_v19 = vld [vmem:[#allocation13 + $0x64] ss:$16 sps:$4 sm:$0xff]   ;;  %v2809_v20 = vld [vmem:[#allocation13 + $0x6c] ss:$16 sps:$4 sm:$0xff]   ;;  %s3406_s26 = smov [#allocation17]  }
  0xbe   :  { %v2824_v31 = vld [vmem:[#allocation13 + $0xc4] ss:$16 sps:$4 sm:$0xff]   ;;  %s2410_s28 = sshll.u32 %s3406_s26, 4  ;;  %s2411_s28 = int_to_ptr.vmem [resolvable:$true] %s2410_s28 }
  0xbf   :  { %377 = vmatpush1.bf16.msra.mxu1 %v2770_v25  ;;  %v2810_v25 = vld [vmem:[#allocation13 + $0x80] ss:$16 sps:$4 sm:$0xff]   ;;  %s3354_s29 = scalar_lea.vmem %s2411_s28, 64  ;;  %p3359_p3 = scmp.lt.s32.totalorder %s2411_s28, %s2411_s28 }
  0xc0   :  { %378 = vmatprep.subr.bf16.mxu1 %v2771_v26  ;;  %v2813_v26 = vld [vmem:[#allocation13 + $0x88] ss:$16 sps:$4 sm:$0xff]   ;;  %p3355_p2 = scmp.ne.s32.totalorder %s2411_s28, %s3354_s29  ;;  %p3360_p4 = scmp.lt.s32.totalorder %s3354_s29, %s3354_s29 }
  0xc2   :  { %p3361_p5 = por %p3360_p4, %p3359_p3 }
  0xc3   :  { %379 = vmatpush1.bf16.msra.mxu1 %v2773_v27  ;;  %v2818_v27 = vld [vmem:[#allocation13 + $0xa4] ss:$16 sps:$4 sm:$0xff]  }
  0xc4   :  { %380 = vmatprep.subr.bf16.mxu1 %v2774_v28  ;;  %v2821_v28 = vld [vmem:[#allocation13 + $0xac] ss:$16 sps:$4 sm:$0xff]   ;;  %p3362_p6 = pnand %p3361_p5, %p3355_p2 }
  0xc7   :  { %381 = vmatpush1.bf16.msra.mxu1 %v2776_v29  ;;  %v2816_v29 = vld [vmem:[#allocation13 + $0xa0] ss:$16 sps:$4 sm:$0xff]  }
  0xc8   :  { %382 = vmatprep.subr.bf16.mxu1 %v2777_v30  ;;  %v2819_v30 = vld [vmem:[#allocation13 + $0xa8] ss:$16 sps:$4 sm:$0xff]  }
  0xcb   :  { %383 = vmatpush1.bf16.msra.mxu1 %v2779_v32  ;;  %v2827_v32 = vld [vmem:[#allocation13 + $0xcc] ss:$16 sps:$4 sm:$0xff]  }
  0xcc   :  { %384 = vmatprep.subr.bf16.mxu1 %v2780_v33  ;;  %v2822_v33 = vld [vmem:[#allocation13 + $0xc0] ss:$16 sps:$4 sm:$0xff]  }
  0xcf   :  { %385 = vmatpush1.bf16.msra.mxu1 %v2782_v34  ;;  %v2825_v34 = vld [vmem:[#allocation13 + $0xc8] ss:$16 sps:$4 sm:$0xff]  }
  0xd0   :  { %386 = vmatprep.subr.bf16.mxu1 %v2783_v35  ;;  %v2830_v35 = vld [vmem:[#allocation13 + $0xe4] ss:$16 sps:$4 sm:$0xff]  }
  0xd3   :  { %387 = vmatpush1.bf16.msra.mxu1 %v2785_v36  ;;  %v2833_v36 = vld [vmem:[#allocation13 + $0xec] ss:$16 sps:$4 sm:$0xff]  }
 0x18c   :  { %v222_v6 = vpop.f32.mrb[0].mxu0 }
 0x18d   :  { %v223_v7 = vadd.f32 %v2423_v5, %v222_v6  ;;  %v2729_v8 = vpop.f32.mrb[1].mxu0 }
 0x18e   :  { %v225_v9 = vpop.f32.mrb[2].mxu0  ;;  %v2788_v8 = vld [vmem:[#allocation13 + $0x4] ss:$16 sps:$4 sm:$0xff]  }
 0x18f   :  { %v2425_v10 = vmul.f32 -1.442695, %v223_v7  ;;  %v2730_v11 = vpop.f32.mrb[3].mxu0  ;;  %v2789_v9 = vld [vmem:[#allocation13 + $0x8] ss:$16 sps:$4 sm:$0xff]   ;;  %880 = vmatprep.subr.bf16.mxu0 %v2788_v8 }
 0x190   :  { %v2794_v11 = vld [vmem:[#allocation13 + $0x24] ss:$16 sps:$4 sm:$0xff]   ;;  %v2867_v8 = vld [vmem:[#allocation13 + $0x1a8] ss:$16 sps:$4 sm:$0xff]  }
 0x191   :  { %3106 = vpow2.f32 %v2425_v10  ;;  %v2791_v10 = vld [vmem:[#allocation13 + $0xc] ss:$16 sps:$4 sm:$0xff]  }
 0x192   :  { %921 = vmatprep.subr.bf16.mxu1 %v2791_v10  ;;  %v2875_v10 = vld [vmem:[#allocation13 + $0x1cc] ss:$16 sps:$4 sm:$0xff]  }
 0x19b   :  { %v3107_v12 = vpop.eup %3106 }
 0x19c   :  { %v231_v13 = vadd.f32 1.0, %v3107_v12  ;;  %v2797_v12 = vld [vmem:[#allocation13 + $0x2c] ss:$16 sps:$4 sm:$0xff]  }
 0x19e   :  { %3108 = vrcp.f32 %v231_v13  ;;  %v2792_v13 = vld [vmem:[#allocation13 + $0x20] ss:$16 sps:$4 sm:$0xff]  }
 0x1a8   :  { %v3109_v14 = vpop.eup %3108 }
 0x1a9   :  { %v234_v15 = vmul.f32 %v3109_v14, %v223_v7  ;;  %v2786_v7 = vld [vmem:[#allocation13] ss:$16 sps:$4 sm:$0xff]   ;;  %v2795_v14 = vld [vmem:[#allocation13 + $0x28] ss:$16 sps:$4 sm:$0xff]  }
 0x1aa   :  { %881 = vmatpush1.bf16.msra.mxu0 %v2786_v7  ;;  %v2864_v7 = vld [vmem:[#allocation13 + $0x1a0] ss:$16 sps:$4 sm:$0xff]  }
 0x1ab   :  { %235 = vadd.xlane.f32.xlu0 %v234_v15  ;;  %882 = vmatprep.subr.bf16.mxu0 %v2794_v11  ;;  %v2870_v11 = vld [vmem:[#allocation13 + $0x1c0] ss:$16 sps:$4 sm:$0xff]  }
 0x1ae   :  { %883 = vmatpush1.bf16.msra.mxu0 %v2792_v13  ;;  %v2878_v13 = vld [vmem:[#allocation13 + $0x1e4] ss:$16 sps:$4 sm:$0xff]  }
 0x238   :  { %v236_v21 = vpop.xlane.xlu0 %235 }
 0x239   :  { %v238_v22 = vmul.f32 0.0078125, %v236_v21  ;;  %v2804_v21 = vld [vmem:[#allocation13 + $0x60] ss:$16 sps:$4 sm:$0xff]  }
 0x23b   :  { %v239_v23 = vsub.f32 %v234_v15, %v238_v22  ;;  %v2800_v15 = vld [vmem:[#allocation13 + $0x44] ss:$16 sps:$4 sm:$0xff]   ;;  %v2807_v22 = vld [vmem:[#allocation13 + $0x68] ss:$16 sps:$4 sm:$0xff]  }
 0x23c   :  { %884 = vmatprep.subr.bf16.mxu0 %v2800_v15  ;;  %v2876_v15 = vld [vmem:[#allocation13 + $0x1e0] ss:$16 sps:$4 sm:$0xff]  }
 0x23d   :  { %v240_v24 = vmul.f32 %v239_v23, %v239_v23  ;;  %885 = vmatpush1.bf16.msra.mxu0 %v2798_v17 }
 0x23e   :  { %886 = vmatprep.subr.bf16.mxu0 %v2806_v19 }
 0x23f   :  { %241 = vadd.xlane.f32.xlu0 %v240_v24  ;;  %v2815_v24 = vld [vmem:[#allocation13 + $0x8c] ss:$16 sps:$4 sm:$0xff]  }
 0x241   :  { %887 = vmatpush1.bf16.msra.mxu0 %v2804_v21  ;;  %v458_v21 = vld [vmem:[%s3744_s8] sm:$0x3] }
 0x2cc   :  { %v242_v37 = vpop.xlane.xlu0 %241 }
 0x2cd   :  { %v243_v38 = vmul.f32 0.0078125, %v242_v37  ;;  %v2828_v37 = vld [vmem:[#allocation13 + $0xe0] ss:$16 sps:$4 sm:$0xff]  }
 0x2cf   :  { %v244_v39 = vadd.f32 1e-05, %v243_v38  ;;  %v2831_v38 = vld [vmem:[#allocation13 + $0xe8] ss:$16 sps:$4 sm:$0xff]  }
 0x2d1   :  { %3110 = vrsqrt.f32 %v244_v39  ;;  %v2836_v39 = vld [vmem:[#allocation13 + $0x104] ss:$16 sps:$4 sm:$0xff]  }
 0x2db   :  { %v3111_v40 = vpop.eup %3110 }
 0x2dc   :  { %v246_v42 = vmul.f32 %v3111_v40, %v239_v23  ;;  %v2812_v23 = vld [vmem:[#allocation13 + $0x84] ss:$16 sps:$4 sm:$0xff]   ;;  %v2839_v40 = vld [vmem:[#allocation13 + $0x10c] ss:$16 sps:$4 sm:$0xff]  }
 0x2dd   :  { %888 = vmatprep.subr.bf16.mxu0 %v2812_v23 }
 0x2de   :  { %v254_v44 = vmul.f32 %v2426_v41, %v246_v42  ;;  %889 = vmatpush1.bf16.msra.mxu0 %v2810_v25  ;;  %v2834_v41 = vld [vmem:[#allocation13 + $0x100] ss:$16 sps:$4 sm:$0xff]   ;;  %v2837_v42 = vld [vmem:[#allocation13 + $0x108] ss:$16 sps:$4 sm:$0xff]  }
 0x2df   :  { %890 = vmatprep.subr.bf16.mxu0 %v2818_v27  ;;  %v467_v27 = vrot.slane %v458_v21, %v3620_v51 }
 0x2e0   :  { %v262_v45 = vadd.f32 %v2427_v43, %v254_v44  ;;  %v2842_v43 = vld [vmem:[#allocation13 + $0x124] ss:$16 sps:$4 sm:$0xff]   ;;  %v2845_v44 = vld [vmem:[#allocation13 + $0x12c] ss:$16 sps:$4 sm:$0xff]  }
 0x2e2   :  { %v263_v46 = vpack.c.bf16 %v262_v45, %v262_v45  ;;  %891 = vmatpush1.bf16.msra.mxu0 %v2816_v29  ;;  %v2840_v45 = vld [vmem:[#allocation13 + $0x120] ss:$16 sps:$4 sm:$0xff]  }
 0x2e3   :  { %892 = vmatprep.subr.bf16.mxu0 %v2824_v31 }
 0x2e4   :  { %405 = vmatmul.mubr.bf16.vlgmr.msra.gmra.mrb[0].mxu1 %v263_v46  ;;  %v2843_v46 = vld [vmem:[#allocation13 + $0x128] ss:$16 sps:$4 sm:$0xff]  }
 0x2e5   :  { %922 = vmatpush1.bf16.msra.mxu1 %v2789_v9  ;;  %v2872_v9 = vld [vmem:[#allocation13 + $0x1c4] ss:$16 sps:$4 sm:$0xff]  }
 0x2e6   :  { %923 = vmatprep.subr.bf16.mxu1 %v2797_v12  ;;  %893 = vmatpush1.bf16.msra.mxu0 %v2822_v33  ;;  %v2873_v12 = vld [vmem:[#allocation13 + $0x1c8] ss:$16 sps:$4 sm:$0xff]  }
 0x2e7   :  { %894 = vmatprep.subr.bf16.mxu0 %v2830_v35  ;;  %v3648_v35 = vsub.s32 2, %v3611_v48 }
 0x2e9   :  { %924 = vmatpush1.bf16.msra.mxu1 %v2795_v14  ;;  %v2881_v14 = vld [vmem:[#allocation13 + $0x1ec] ss:$16 sps:$4 sm:$0xff]  }
 0x2ea   :  { %925 = vmatprep.subr.bf16.mxu1 %v2803_v16  ;;  %895 = vmatpush1.bf16.msra.mxu0 %v2828_v37  ;;  %v2879_v16 = vld [vmem:[#allocation13 + $0x1e8] ss:$16 sps:$4 sm:$0xff]   ;;  %v3654_v37 = vsub.s32 3, %v3611_v48 }
 0x2eb   :  { %896 = vmatprep.subr.bf16.mxu0 %v2836_v39 }
 0x2ed   :  { %926 = vmatpush1.bf16.msra.mxu1 %v2801_v18 }
 0x2ee   :  { %927 = vmatprep.subr.bf16.mxu1 %v2809_v20  ;;  %897 = vmatpush1.bf16.msra.mxu0 %v2834_v41  ;;  %v444_v20 = vld [vmem:[%s3743_s7] sm:$0x3] }
 0x2ef   :  { %898 = vmatprep.subr.bf16.mxu0 %v2842_v43  ;;  %v453_v23 = vrot.slane %v444_v20, %v3620_v51 }
 0x2f1   :  { %928 = vmatpush1.bf16.msra.mxu1 %v2807_v22  ;;  %v449_v22 = vrot.slane %v444_v20, %v3614_v49  ;;  %v2893_v20 = vld [vmem:[#allocation14 + $0x2c] ss:$16 sps:$4 sm:$0xff]  }
 0x2f2   :  { %929 = vmatprep.subr.bf16.mxu1 %v2815_v24  ;;  %899 = vmatpush1.bf16.msra.mxu0 %v2840_v45 }
 0x2f5   :  { %930 = vmatpush1.bf16.msra.mxu1 %v2813_v26  ;;  %v463_v26 = vrot.slane %v458_v21, %v3614_v49  ;;  %v2888_v21 = vld [vmem:[#allocation14 + $0x20] ss:$16 sps:$4 sm:$0xff]  }
 0x2f6   :  { %931 = vmatprep.subr.bf16.mxu1 %v2821_v28 }
 0x2f9   :  { %932 = vmatpush1.bf16.msra.mxu1 %v2819_v30 }
 0x2fa   :  { %933 = vmatprep.subr.bf16.mxu1 %v2827_v32 }
 0x2fd   :  { %934 = vmatpush1.bf16.msra.mxu1 %v2825_v34 }
 0x2fe   :  { %935 = vmatprep.subr.bf16.mxu1 %v2833_v36  ;;  %v538_v36 = vld [vmem:[%s3746_s10] sm:$0xf] }
 0x2ff   :  { %v551_v39 = vrot.slane %v538_v36, %v3648_v35  ;;  %v555_v41 = vrot.slane %v538_v36, %v3654_v37 }
 0x301   :  { %936 = vmatpush1.bf16.msra.mxu1 %v2831_v38  ;;  %v543_v38 = vrot.slane %v538_v36, %v3614_v49 }
 0x302   :  { %937 = vmatprep.subr.bf16.mxu1 %v2839_v40  ;;  %v547_v40 = vrot.slane %v538_v36, %v3620_v51  ;;  %v2914_v36 = vld [vmem:[#allocation14 + $0xa4] ss:$16 sps:$4 sm:$0xff]  }
 0x305   :  { %938 = vmatpush1.bf16.msra.mxu1 %v2837_v42 }
 0x306   :  { %939 = vmatprep.subr.bf16.mxu1 %v2845_v44 }
 0x309   :  { %940 = vmatpush1.bf16.msra.mxu1 %v2843_v46 }
 0x3b7   :  { %v406_v54 = vpop.f32.mrb[0].mxu1 }
 0x3b8   :  { %v407_v55 = vadd.f32 %v406_v54, %v285_v52  ;;  %v408_v56 = vpop.f32.mrb[1].mxu1 }
 0x3b9   :  { %v409_v57 = vadd.f32 %v408_v56, %v289_v53  ;;  %v410_v58 = vpop.f32.mrb[2].mxu1 }
 0x3ba   :  { %v2444_v59 = vmul.f32 -1.442695, %v407_v55  ;;  %v411_v60 = vpop.f32.mrb[3].mxu1  ;;  %v2851_v58 = vld [vmem:[#allocation13 + $0x14c] ss:$16 sps:$4 sm:$0xff]  }
 0x3bb   :  { %v2445_v61 = vmul.f32 -1.442695, %v409_v57  ;;  %v2849_v60 = vld [vmem:[#allocation13 + $0x148] ss:$16 sps:$4 sm:$0xff]   ;;  %941 = vmatprep.subr.bf16.mxu1 %v2851_v58 }
 0x3bc   :  { %3112 = vpow2.f32 %v2444_v59  ;;  %v2846_v59 = vld [vmem:[#allocation13 + $0x140] ss:$16 sps:$4 sm:$0xff]   ;;  %942 = vmatpush1.bf16.msra.mxu1 %v2849_v60 }
 0x3bd   :  { %3114 = vpow2.f32 %v2445_v61  ;;  %v2854_v61 = vld [vmem:[#allocation13 + $0x164] ss:$16 sps:$4 sm:$0xff]  }
 0x3c6   :  { %v3113_v62 = vpop.eup %3112 }
 0x3c7   :  { %v3115_v63 = vpop.eup %3114  ;;  %v419_v0 = vadd.f32 1.0, %v3113_v62  ;;  %v2857_v62 = vld [vmem:[#allocation13 + $0x16c] ss:$16 sps:$4 sm:$0xff]  }
 0x3c8   :  { %v420_v1 = vadd.f32 1.0, %v3115_v63  ;;  %v2852_v63 = vld [vmem:[#allocation13 + $0x160] ss:$16 sps:$4 sm:$0xff]   ;;  %943 = vmatprep.subr.bf16.mxu1 %v2857_v62 }
 0x3c9   :  { %3116 = vrcp.f32 %v419_v0  ;;  %v2855_v0 = vld [vmem:[#allocation13 + $0x168] ss:$16 sps:$4 sm:$0xff]  }
 0x3ca   :  { %3118 = vrcp.f32 %v420_v1  ;;  %v2860_v1 = vld [vmem:[#allocation13 + $0x184] ss:$16 sps:$4 sm:$0xff]   ;;  %944 = vmatpush1.bf16.msra.mxu1 %v2855_v0 }
 0x3d3   :  { %v3117_v2 = vpop.eup %3116 }
 0x3d4   :  { %v3119_v3 = vpop.eup %3118  ;;  %v3624_v4 = vmul.f32 %v3117_v2, %v407_v55  ;;  %v2858_v2 = vld [vmem:[#allocation13 + $0x180] ss:$16 sps:$4 sm:$0xff]  }
 0x3d5   :  { %v3626_v5 = vmul.f32 %v3119_v3, %v409_v57  ;;  %v2848_v57 = vld [vmem:[#allocation13 + $0x144] ss:$16 sps:$4 sm:$0xff]   ;;  %v2861_v3 = vld [vmem:[#allocation13 + $0x188] ss:$16 sps:$4 sm:$0xff]  }
 0x3d6   :  { %900 = vmatprep.subr.bf16.mxu0 %v2848_v57 }
 0x3d7   :  { %v427_v6 = vadd.f32 %v3626_v5, %v3624_v4  ;;  %901 = vmatpush1.bf16.msra.mxu0 %v2846_v59 }
 0x3d8   :  { %902 = vmatprep.subr.bf16.mxu0 %v2854_v61 }
 0x3d9   :  { %428 = vadd.xlane.f32.xlu1 %v427_v6  ;;  %v2869_v6 = vld [vmem:[#allocation13 + $0x1ac] ss:$16 sps:$4 sm:$0xff]  }
 0x3db   :  { %903 = vmatpush1.bf16.msra.mxu0 %v2852_v63 }
 0x3dc   :  { %904 = vmatprep.subr.bf16.mxu0 %v2860_v1 }
 0x3df   :  { %905 = vmatpush1.bf16.msra.mxu0 %v2858_v2 }
 0x466   :  { %v429_v47 = vpop.xlane.xlu1 %428 }
 0x467   :  { %v431_v50 = vmul.f32 0.00390625, %v429_v47 }
 0x469   :  { %v3631_v52 = vsub.f32 %v3624_v4, %v431_v50  ;;  %v433_v53 = vsub.f32 %v3626_v5, %v431_v50  ;;  %v2863_v4 = vld [vmem:[#allocation13 + $0x18c] ss:$16 sps:$4 sm:$0xff]   ;;  %v2866_v5 = vld [vmem:[#allocation13 + $0x1a4] ss:$16 sps:$4 sm:$0xff]  }
 0x46a   :  { %945 = vmatprep.subr.bf16.mxu1 %v2863_v4  ;;  %906 = vmatprep.subr.bf16.mxu0 %v2866_v5 }
 0x46b   :  { %v434_v54 = vmul.f32 %v3631_v52, %v3631_v52  ;;  %v435_v55 = vmul.f32 %v433_v53, %v433_v53  ;;  %946 = vmatpush1.bf16.msra.mxu1 %v2861_v3  ;;  %907 = vmatpush1.bf16.msra.mxu0 %v2864_v7 }
 0x46c   :  { %947 = vmatprep.subr.bf16.mxu1 %v2869_v6  ;;  %908 = vmatprep.subr.bf16.mxu0 %v2872_v9 }
 0x46d   :  { %v436_v56 = vadd.f32 %v435_v55, %v434_v54 }
 0x46f   :  { %437 = vadd.xlane.f32.xlu1 %v436_v56  ;;  %948 = vmatpush1.bf16.msra.mxu1 %v2867_v8 }
 0x470   :  { %949 = vmatprep.subr.bf16.mxu1 %v2875_v10  ;;  %909 = vmatpush1.bf16.msra.mxu0 %v2870_v11 }
 0x471   :  { %910 = vmatprep.subr.bf16.mxu0 %v2878_v13 }
 0x473   :  { %950 = vmatpush1.bf16.msra.mxu1 %v2873_v12 }
 0x474   :  { %951 = vmatprep.subr.bf16.mxu1 %v2881_v14  ;;  %911 = vmatpush1.bf16.msra.mxu0 %v2876_v15  ;;  %v2882_v15 = vld [vmem:[#allocation14] ss:$16 sps:$4 sm:$0xff]  }
 0x477   :  { %952 = vmatpush1.bf16.msra.mxu1 %v2879_v16  ;;  %v2884_v16 = vld [vmem:[#allocation14 + $0x4] ss:$16 sps:$4 sm:$0xff]  }
 0x478   :  { %1863 = vmatprep.subr.bf16.mxu0 %v2884_v16  ;;  %v2956_v16 = vld [vmem:[#allocation14 + $0x184] ss:$16 sps:$4 sm:$0xff]  }
 0x4fc   :  { %v438_v17 = vpop.xlane.xlu1 %437 }
 0x4fd   :  { %v439_v18 = vmul.f32 0.00390625, %v438_v17  ;;  %v2885_v17 = vld [vmem:[#allocation14 + $0x8] ss:$16 sps:$4 sm:$0xff]  }
 0x4ff   :  { %v440_v19 = vadd.f32 1e-05, %v439_v18  ;;  %v2887_v18 = vld [vmem:[#allocation14 + $0xc] ss:$16 sps:$4 sm:$0xff]  }
 0x500   :  { %1945 = vmatprep.subr.bf16.mxu1 %v2887_v18  ;;  %v2957_v18 = vld [vmem:[#allocation14 + $0x188] ss:$16 sps:$4 sm:$0xff]  }
 0x501   :  { %3120 = vrsqrt.f32 %v440_v19  ;;  %v2890_v19 = vld [vmem:[#allocation14 + $0x24] ss:$16 sps:$4 sm:$0xff]  }
 0x50b   :  { %v3121_v24 = vpop.eup %3120 }
 0x50c   :  { %v443_v25 = vmul.f32 %v3121_v24, %v433_v53  ;;  %v442_v28 = vmul.f32 %v3121_v24, %v3631_v52  ;;  %v2899_v24 = vld [vmem:[#allocation14 + $0x4c] ss:$16 sps:$4 sm:$0xff]  }
 0x50e   :  { %v457_v29 = vmul.f32 %v453_v23, %v443_v25  ;;  %v456_v30 = vmul.f32 %v449_v22, %v442_v28  ;;  %v2891_v22 = vld [vmem:[#allocation14 + $0x28] ss:$16 sps:$4 sm:$0xff]   ;;  %v2896_v23 = vld [vmem:[#allocation14 + $0x44] ss:$16 sps:$4 sm:$0xff]   ;;  %v2894_v25 = vld [vmem:[#allocation14 + $0x40] ss:$16 sps:$4 sm:$0xff]  }
 0x50f   :  { %v2905_v28 = vld [vmem:[#allocation14 + $0x6c] ss:$16 sps:$4 sm:$0xff]  }
 0x510   :  { %v471_v31 = vadd.f32 %v467_v27, %v457_v29  ;;  %v470_v32 = vadd.f32 %v463_v26, %v456_v30  ;;  %v2897_v26 = vld [vmem:[#allocation14 + $0x48] ss:$16 sps:$4 sm:$0xff]   ;;  %v2902_v27 = vld [vmem:[#allocation14 + $0x64] ss:$16 sps:$4 sm:$0xff]   ;;  %v2900_v29 = vld [vmem:[#allocation14 + $0x60] ss:$16 sps:$4 sm:$0xff]  }
 0x511   :  { %v2903_v30 = vld [vmem:[#allocation14 + $0x68] ss:$16 sps:$4 sm:$0xff]  }
 0x512   :  { %v473_v33 = vpack.c.bf16 %v471_v31, %v471_v31  ;;  %v472_v34 = vpack.c.bf16 %v470_v32, %v470_v32  ;;  %v2908_v31 = vld [vmem:[#allocation14 + $0x84] ss:$16 sps:$4 sm:$0xff]   ;;  %v2911_v32 = vld [vmem:[#allocation14 + $0x8c] ss:$16 sps:$4 sm:$0xff]  }
 0x514   :  { %912 = vmatprep.mubr.bf16.mxu0 %v473_v33  ;;  %953 = vmatprep.mubr.bf16.mxu1 %v473_v33  ;;  %v2906_v33 = vld [vmem:[#allocation14 + $0x80] ss:$16 sps:$4 sm:$0xff]  }
 0x515   :  { %913 = vmatmul.mubr.bf16.vlgmr.msra.gmra.mrb[4].mxu0 %v472_v34  ;;  %954 = vmatmul.mubr.bf16.vlgmr.msra.gmra.mrb[4].mxu1 %v472_v34  ;;  %v2909_v34 = vld [vmem:[#allocation14 + $0x88] ss:$16 sps:$4 sm:$0xff]  }
 0x516   :  { %1864 = vmatpush1.bf16.msra.mxu0 %v2882_v15  ;;  %1946 = vmatpush1.bf16.msra.mxu1 %v2885_v17  ;;  %v2951_v15 = vld [vmem:[#allocation14 + $0x168] ss:$16 sps:$4 sm:$0xff]   ;;  %v2954_v17 = vld [vmem:[#allocation14 + $0x180] ss:$16 sps:$4 sm:$0xff]  }
 0x517   :  { %1865 = vmatprep.subr.bf16.mxu0 %v2890_v19  ;;  %1947 = vmatprep.subr.bf16.mxu1 %v2893_v20  ;;  %v2959_v19 = vld [vmem:[#allocation14 + $0x18c] ss:$16 sps:$4 sm:$0xff]   ;;  %v2962_v20 = vld [vmem:[#allocation14 + $0x1a4] ss:$16 sps:$4 sm:$0xff]  }
 0x51a   :  { %1866 = vmatpush1.bf16.msra.mxu0 %v2888_v21  ;;  %1948 = vmatpush1.bf16.msra.mxu1 %v2891_v22  ;;  %v2965_v21 = vld [vmem:[#allocation14 + $0x1ac] ss:$16 sps:$4 sm:$0xff]   ;;  %v2960_v22 = vld [vmem:[#allocation14 + $0x1a0] ss:$16 sps:$4 sm:$0xff]  }
 0x51b   :  { %1867 = vmatprep.subr.bf16.mxu0 %v2896_v23  ;;  %1949 = vmatprep.subr.bf16.mxu1 %v2899_v24  ;;  %v2963_v23 = vld [vmem:[#allocation14 + $0x1a8] ss:$16 sps:$4 sm:$0xff]   ;;  %v2968_v24 = vld [vmem:[#allocation14 + $0x1c4] ss:$16 sps:$4 sm:$0xff]  }
 0x51e   :  { %1868 = vmatpush1.bf16.msra.mxu0 %v2894_v25  ;;  %1950 = vmatpush1.bf16.msra.mxu1 %v2897_v26  ;;  %v2971_v25 = vld [vmem:[#allocation14 + $0x1cc] ss:$16 sps:$4 sm:$0xff]   ;;  %v2966_v26 = vld [vmem:[#allocation14 + $0x1c0] ss:$16 sps:$4 sm:$0xff]  }
 0x51f   :  { %1869 = vmatprep.subr.bf16.mxu0 %v2902_v27  ;;  %1951 = vmatprep.subr.bf16.mxu1 %v2905_v28  ;;  %v2969_v27 = vld [vmem:[#allocation14 + $0x1c8] ss:$16 sps:$4 sm:$0xff]   ;;  %v2974_v28 = vld [vmem:[#allocation14 + $0x1e4] ss:$16 sps:$4 sm:$0xff]  }
 0x522   :  { %1870 = vmatpush1.bf16.msra.mxu0 %v2900_v29  ;;  %1952 = vmatpush1.bf16.msra.mxu1 %v2903_v30  ;;  %v2977_v29 = vld [vmem:[#allocation14 + $0x1ec] ss:$16 sps:$4 sm:$0xff]   ;;  %v2972_v30 = vld [vmem:[#allocation14 + $0x1e0] ss:$16 sps:$4 sm:$0xff]  }
 0x523   :  { %1871 = vmatprep.subr.bf16.mxu0 %v2908_v31  ;;  %1953 = vmatprep.subr.bf16.mxu1 %v2911_v32  ;;  %v2975_v31 = vld [vmem:[#allocation14 + $0x1e8] ss:$16 sps:$4 sm:$0xff]   ;;  %v2980_v32 = vld [vmem:[#allocation14 + $0x204] ss:$16 sps:$4 sm:$0xff]  }
 0x526   :  { %1872 = vmatpush1.bf16.msra.mxu0 %v2906_v33  ;;  %1954 = vmatpush1.bf16.msra.mxu1 %v2909_v34  ;;  %v2983_v33 = vld [vmem:[#allocation14 + $0x20c] ss:$16 sps:$4 sm:$0xff]  }
 0x527   :  { %1873 = vmatprep.subr.bf16.mxu0 %v2914_v36 }
 0x5e8   :  { %v914_v42 = vpop.f32.mrb[4].mxu0  ;;  %v955_v43 = vpop.f32.mrb[4].mxu1 }
 0x5e9   :  { %v915_v44 = vadd.f32 %v914_v42, %v543_v38  ;;  %v956_v45 = vadd.f32 %v955_v43, %v551_v39  ;;  %v916_v46 = vpop.f32.mrb[5].mxu0  ;;  %v957_v47 = vpop.f32.mrb[5].mxu1  ;;  %v2917_v38 = vld [vmem:[#allocation14 + $0xac] ss:$16 sps:$4 sm:$0xff]   ;;  %v2912_v39 = vld [vmem:[#allocation14 + $0xa0] ss:$16 sps:$4 sm:$0xff]  }
 0x5ea   :  { %v917_v50 = vadd.f32 %v916_v46, %v547_v40  ;;  %v958_v52 = vadd.f32 %v957_v47, %v555_v41  ;;  %v918_v53 = vpop.f32.mrb[6].mxu0  ;;  %v959_v54 = vpop.f32.mrb[6].mxu1  ;;  %v2915_v40 = vld [vmem:[#allocation14 + $0xa8] ss:$16 sps:$4 sm:$0xff]   ;;  %v2920_v41 = vld [vmem:[#allocation14 + $0xc4] ss:$16 sps:$4 sm:$0xff]   ;;  %1955 = vmatprep.subr.bf16.mxu1 %v2917_v38  ;;  %1874 = vmatpush1.bf16.msra.mxu0 %v2912_v39 }
 0x5eb   :  { %v2510_v48 = vmul.f32 -1.442695, %v915_v44  ;;  %v2512_v55 = vmul.f32 -1.442695, %v956_v45  ;;  %v919_v56 = vpop.f32.mrb[7].mxu0  ;;  %v960_v57 = vpop.f32.mrb[7].mxu1  ;;  %1956 = vmatpush1.bf16.msra.mxu1 %v2915_v40  ;;  %1875 = vmatprep.subr.bf16.mxu0 %v2920_v41 }
 0x5ec   :  { %v2511_v58 = vmul.f32 -1.442695, %v917_v50  ;;  %v2513_v59 = vmul.f32 -1.442695, %v958_v52  ;;  %v2923_v42 = vld [vmem:[#allocation14 + $0xcc] ss:$16 sps:$4 sm:$0xff]  }
 0x5ed   :  { %3122 = vpow2.f32 %v2510_v48  ;;  %v2918_v43 = vld [vmem:[#allocation14 + $0xc0] ss:$16 sps:$4 sm:$0xff]   ;;  %1957 = vmatprep.subr.bf16.mxu1 %v2923_v42  ;;  %v2929_v46 = vld [vmem:[#allocation14 + $0xec] ss:$16 sps:$4 sm:$0xff]   ;;  %v2933_v48 = vld [vmem:[#allocation14 + $0x108] ss:$16 sps:$4 sm:$0xff]  }
 0x5ee   :  { %3124 = vpow2.f32 %v2512_v55  ;;  %1876 = vmatpush1.bf16.msra.mxu0 %v2918_v43  ;;  %v2924_v47 = vld [vmem:[#allocation14 + $0xe0] ss:$16 sps:$4 sm:$0xff]   ;;  %v2935_v53 = vld [vmem:[#allocation14 + $0x10c] ss:$16 sps:$4 sm:$0xff]   ;;  %v2938_v55 = vld [vmem:[#allocation14 + $0x124] ss:$16 sps:$4 sm:$0xff]  }
 0x5ef   :  { %3126 = vpow2.f32 %v2511_v58  ;;  %v2930_v54 = vld [vmem:[#allocation14 + $0x100] ss:$16 sps:$4 sm:$0xff]   ;;  %v2941_v56 = vld [vmem:[#allocation14 + $0x12c] ss:$16 sps:$4 sm:$0xff]   ;;  %v2939_v58 = vld [vmem:[#allocation14 + $0x128] ss:$16 sps:$4 sm:$0xff]  }
 0x5f0   :  { %3128 = vpow2.f32 %v2513_v59  ;;  %v2936_v57 = vld [vmem:[#allocation14 + $0x120] ss:$16 sps:$4 sm:$0xff]   ;;  %v2944_v59 = vld [vmem:[#allocation14 + $0x144] ss:$16 sps:$4 sm:$0xff]  }
 0x5f1   :  { %v1017_v39 = vld [vmem:[%s3747_s11] sm:$0xf] }
 0x5f2   :  { %v1043_v40 = vld [vmem:[%s3748_s12] sm:$0xf]  ;;  %v1026_v41 = vrot.slane %v1017_v39, %v3620_v51  ;;  %v1022_v42 = vrot.slane %v1017_v39, %v3614_v49  ;;  %v1034_v43 = vrot.slane %v1017_v39, %v3654_v37 }
 0x5f7   :  { %v3123_v60 = vpop.eup %3122 }
 0x5f8   :  { %v3125_v61 = vpop.eup %3124  ;;  %v974_v62 = vadd.f32 1.0, %v3123_v60  ;;  %v2947_v60 = vld [vmem:[#allocation14 + $0x14c] ss:$16 sps:$4 sm:$0xff]  }
 0x5f9   :  { %v3127_v63 = vpop.eup %3126  ;;  %v976_v0 = vadd.f32 1.0, %v3125_v61  ;;  %v2942_v61 = vld [vmem:[#allocation14 + $0x140] ss:$16 sps:$4 sm:$0xff]  }
 0x5fa   :  { %v3129_v1 = vpop.eup %3128  ;;  %3130 = vrcp.f32 %v974_v62  ;;  %v975_v2 = vadd.f32 1.0, %v3127_v63  ;;  %v2945_v62 = vld [vmem:[#allocation14 + $0x148] ss:$16 sps:$4 sm:$0xff]  }
 0x5fb   :  { %3132 = vrcp.f32 %v976_v0  ;;  %v977_v3 = vadd.f32 1.0, %v3129_v1 }
 0x5fc   :  { %3134 = vrcp.f32 %v975_v2 }
 0x5fd   :  { %3136 = vrcp.f32 %v977_v3 }
 0x604   :  { %v3131_v4 = vpop.eup %3130 }
 0x605   :  { %v3133_v5 = vpop.eup %3132  ;;  %v3660_v6 = vmul.f32 %v3131_v4, %v915_v44  ;;  %v2921_v44 = vld [vmem:[#allocation14 + $0xc8] ss:$16 sps:$4 sm:$0xff]  }
 0x606   :  { %v3135_v7 = vpop.eup %3134  ;;  %v3664_v10 = vmul.f32 %v3133_v5, %v956_v45  ;;  %v2926_v45 = vld [vmem:[#allocation14 + $0xe4] ss:$16 sps:$4 sm:$0xff]   ;;  %1958 = vmatpush1.bf16.msra.mxu1 %v2921_v44  ;;  %v1030_v44 = vrot.slane %v1017_v39, %v3648_v35 }
 0x607   :  { %v3662_v8 = vmul.f32 %v3135_v7, %v917_v50  ;;  %v3137_v9 = vpop.eup %3136  ;;  %1877 = vmatprep.subr.bf16.mxu0 %v2926_v45  ;;  %v2927_v50 = vld [vmem:[#allocation14 + $0xe8] ss:$16 sps:$4 sm:$0xff]   ;;  %1959 = vmatprep.subr.bf16.mxu1 %v2929_v46  ;;  %v1052_v46 = vrot.slane %v1043_v40, %v3620_v51  ;;  %v3034_v39 = vld [vmem:[#allocation14 + $0x324] ss:$16 sps:$4 sm:$0xff]  }
 0x608   :  { %v3668_v12 = vmul.f32 %v3137_v9, %v958_v52  ;;  %v2932_v52 = vld [vmem:[#allocation14 + $0x104] ss:$16 sps:$4 sm:$0xff]   ;;  %1878 = vmatpush1.bf16.msra.mxu0 %v2924_v47  ;;  %v1048_v47 = vrot.slane %v1043_v40, %v3614_v49 }
 0x609   :  { %v990_v11 = vadd.f32 %v3662_v8, %v3660_v6  ;;  %1879 = vmatprep.subr.bf16.mxu0 %v2932_v52 }
 0x60a   :  { %1960 = vmatpush1.bf16.msra.mxu1 %v2927_v50  ;;  %v1056_v50 = vrot.slane %v1043_v40, %v3648_v35 }
 0x60b   :  { %v991_v13 = vadd.f32 %v990_v11, %v3664_v10  ;;  %1961 = vmatprep.subr.bf16.mxu1 %v2935_v53 }
 0x60c   :  { %1880 = vmatpush1.bf16.msra.mxu0 %v2930_v54 }
 0x60d   :  { %v992_v14 = vadd.f32 %v991_v13, %v3668_v12  ;;  %1881 = vmatprep.subr.bf16.mxu0 %v2938_v55  ;;  %v1060_v55 = vrot.slane %v1043_v40, %v3654_v37  ;;  %v3037_v40 = vld [vmem:[#allocation14 + $0x32c] ss:$16 sps:$4 sm:$0xff]  }
 0x60e   :  { %1962 = vmatpush1.bf16.msra.mxu1 %v2933_v48 }
 0x60f   :  { %993 = vadd.xlane.f32.xlu0 %v992_v14  ;;  %1963 = vmatprep.subr.bf16.mxu1 %v2941_v56  ;;  %v2953_v14 = vld [vmem:[#allocation14 + $0x16c] ss:$16 sps:$4 sm:$0xff]  }
 0x610   :  { %1882 = vmatpush1.bf16.msra.mxu0 %v2936_v57 }
 0x611   :  { %1883 = vmatprep.subr.bf16.mxu0 %v2944_v59 }
 0x612   :  { %1964 = vmatpush1.bf16.msra.mxu1 %v2939_v58 }
 0x613   :  { %1965 = vmatprep.subr.bf16.mxu1 %v2947_v60 }
 0x614   :  { %1884 = vmatpush1.bf16.msra.mxu0 %v2942_v61 }
 0x616   :  { %1966 = vmatpush1.bf16.msra.mxu1 %v2945_v62 }
 0x617   :  { %1967 = vmatprep.subr.bf16.mxu1 %v2953_v14  ;;  %v2998_v14 = vld [vmem:[#allocation14 + $0x264] ss:$16 sps:$4 sm:$0xff]  }
 0x61a   :  { %1968 = vmatpush1.bf16.msra.mxu1 %v2951_v15  ;;  %v2996_v15 = vld [vmem:[#allocation14 + $0x260] ss:$16 sps:$4 sm:$0xff]  }
 0x61b   :  { %1969 = vmatprep.subr.bf16.mxu1 %v2959_v19  ;;  %v3002_v19 = vld [vmem:[#allocation14 + $0x280] ss:$16 sps:$4 sm:$0xff]  }
 0x61e   :  { %1970 = vmatpush1.bf16.msra.mxu1 %v2957_v18  ;;  %v3007_v18 = vld [vmem:[#allocation14 + $0x28c] ss:$16 sps:$4 sm:$0xff]  }
 0x61f   :  { %1971 = vmatprep.subr.bf16.mxu1 %v2965_v21  ;;  %v3010_v21 = vld [vmem:[#allocation14 + $0x2a4] ss:$16 sps:$4 sm:$0xff]  }
 0x622   :  { %1972 = vmatpush1.bf16.msra.mxu1 %v2963_v23  ;;  %v3008_v23 = vld [vmem:[#allocation14 + $0x2a0] ss:$16 sps:$4 sm:$0xff]  }
 0x623   :  { %1973 = vmatprep.subr.bf16.mxu1 %v2971_v25  ;;  %v3016_v25 = vld [vmem:[#allocation14 + $0x2c4] ss:$16 sps:$4 sm:$0xff]  }
 0x626   :  { %1974 = vmatpush1.bf16.msra.mxu1 %v2969_v27  ;;  %v3014_v27 = vld [vmem:[#allocation14 + $0x2c0] ss:$16 sps:$4 sm:$0xff]  }
 0x627   :  { %1975 = vmatprep.subr.bf16.mxu1 %v2977_v29  ;;  %v3022_v29 = vld [vmem:[#allocation14 + $0x2e4] ss:$16 sps:$4 sm:$0xff]  }
 0x62a   :  { %1976 = vmatpush1.bf16.msra.mxu1 %v2975_v31  ;;  %v3020_v31 = vld [vmem:[#allocation14 + $0x2e0] ss:$16 sps:$4 sm:$0xff]  }
 0x62b   :  { %1986 = vmatprep.subr.bf16.mxu1 %v2983_v33  ;;  %v3028_v33 = vld [vmem:[#allocation14 + $0x304] ss:$16 sps:$4 sm:$0xff]  }
 0x69c   :  { %v994_v63 = vpop.xlane.xlu0 %993 }
 0x69d   :  { %v996_v0 = vmul.f32 0.001953125, %v994_v63 }
 0x69f   :  { %v3673_v1 = vsub.f32 %v3660_v6, %v996_v0  ;;  %v3676_v2 = vsub.f32 %v3662_v8, %v996_v0  ;;  %v3679_v3 = vsub.f32 %v3664_v10, %v996_v0  ;;  %v3682_v4 = vsub.f32 %v3668_v12, %v996_v0  ;;  %v2950_v10 = vld [vmem:[#allocation14 + $0x164] ss:$16 sps:$4 sm:$0xff]   ;;  %v2948_v12 = vld [vmem:[#allocation14 + $0x160] ss:$16 sps:$4 sm:$0xff]  }
 0x6a0   :  { %1885 = vmatprep.subr.bf16.mxu0 %v2950_v10  ;;  %v2993_v10 = vld [vmem:[#allocation14 + $0x248] ss:$16 sps:$4 sm:$0xff]  }
 0x6a1   :  { %v1001_v5 = vmul.f32 %v3673_v1, %v3673_v1  ;;  %v1002_v7 = vmul.f32 %v3676_v2, %v3676_v2  ;;  %v1003_v9 = vmul.f32 %v3679_v3, %v3679_v3  ;;  %v1004_v8 = vmul.f32 %v3682_v4, %v3682_v4  ;;  %1886 = vmatpush1.bf16.msra.mxu0 %v2948_v12  ;;  %v3001_v12 = vld [vmem:[#allocation14 + $0x26c] ss:$16 sps:$4 sm:$0xff]  }
 0x6a2   :  { %1887 = vmatprep.subr.bf16.mxu0 %v2956_v16  ;;  %v2999_v16 = vld [vmem:[#allocation14 + $0x268] ss:$16 sps:$4 sm:$0xff]  }
 0x6a3   :  { %v1005_v6 = vadd.f32 %v1002_v7, %v1001_v5  ;;  %v2978_v5 = vld [vmem:[#allocation14 + $0x200] ss:$16 sps:$4 sm:$0xff]  }
 0x6a5   :  { %v1006_v11 = vadd.f32 %v1005_v6, %v1003_v9  ;;  %1888 = vmatpush1.bf16.msra.mxu0 %v2954_v17  ;;  %v2984_v9 = vld [vmem:[#allocation14 + $0x220] ss:$16 sps:$4 sm:$0xff]   ;;  %v2987_v6 = vld [vmem:[#allocation14 + $0x228] ss:$16 sps:$4 sm:$0xff]   ;;  %v3004_v17 = vld [vmem:[#allocation14 + $0x284] ss:$16 sps:$4 sm:$0xff]  }
 0x6a6   :  { %1889 = vmatprep.subr.bf16.mxu0 %v2962_v20  ;;  %v3005_v20 = vld [vmem:[#allocation14 + $0x288] ss:$16 sps:$4 sm:$0xff]  }
 0x6a7   :  { %v1007_v13 = vadd.f32 %v1006_v11, %v1004_v8  ;;  %v2992_v8 = vld [vmem:[#allocation14 + $0x244] ss:$16 sps:$4 sm:$0xff]   ;;  %v2995_v11 = vld [vmem:[#allocation14 + $0x24c] ss:$16 sps:$4 sm:$0xff]  }
 0x6a9   :  { %1008 = vadd.xlane.f32.xlu1 %v1007_v13  ;;  %1890 = vmatpush1.bf16.msra.mxu0 %v2960_v22  ;;  %v2990_v13 = vld [vmem:[#allocation14 + $0x240] ss:$16 sps:$4 sm:$0xff]   ;;  %v3013_v22 = vld [vmem:[#allocation14 + $0x2ac] ss:$16 sps:$4 sm:$0xff]  }
 0x6aa   :  { %1891 = vmatprep.subr.bf16.mxu0 %v2968_v24  ;;  %v3011_v24 = vld [vmem:[#allocation14 + $0x2a8] ss:$16 sps:$4 sm:$0xff]  }
 0x6ad   :  { %1892 = vmatpush1.bf16.msra.mxu0 %v2966_v26  ;;  %v3019_v26 = vld [vmem:[#allocation14 + $0x2cc] ss:$16 sps:$4 sm:$0xff]  }
 0x6ae   :  { %1893 = vmatprep.subr.bf16.mxu0 %v2974_v28  ;;  %v3017_v28 = vld [vmem:[#allocation14 + $0x2c8] ss:$16 sps:$4 sm:$0xff]  }
 0x6b1   :  { %1894 = vmatpush1.bf16.msra.mxu0 %v2972_v30  ;;  %v3025_v30 = vld [vmem:[#allocation14 + $0x2ec] ss:$16 sps:$4 sm:$0xff]  }
 0x6b2   :  { %1904 = vmatprep.subr.bf16.mxu0 %v2980_v32  ;;  %v3023_v32 = vld [vmem:[#allocation14 + $0x2e8] ss:$16 sps:$4 sm:$0xff]  }
 0x736   :  { %v1009_v34 = vpop.xlane.xlu1 %1008 }
 0x737   :  { %v1010_v36 = vmul.f32 0.001953125, %v1009_v34  ;;  %v3031_v34 = vld [vmem:[#allocation14 + $0x30c] ss:$16 sps:$4 sm:$0xff]  }
 0x739   :  { %v1011_v38 = vadd.f32 1e-05, %v1010_v36  ;;  %v3026_v36 = vld [vmem:[#allocation14 + $0x300] ss:$16 sps:$4 sm:$0xff]  }
 0x73b   :  { %3138 = vrsqrt.f32 %v1011_v38  ;;  %v3029_v38 = vld [vmem:[#allocation14 + $0x308] ss:$16 sps:$4 sm:$0xff]  }
 0x745   :  { %v3139_v45 = vpop.eup %3138 }
 0x746   :  { %v1014_v52 = vmul.f32 %v3139_v45, %v3676_v2  ;;  %v1013_v53 = vmul.f32 %v3139_v45, %v3673_v1  ;;  %v1016_v54 = vmul.f32 %v3139_v45, %v3682_v4  ;;  %v1015_v48 = vmul.f32 %v3139_v45, %v3679_v3  ;;  %v2981_v2 = vld [vmem:[#allocation14 + $0x208] ss:$16 sps:$4 sm:$0xff]   ;;  %v2986_v1 = vld [vmem:[#allocation14 + $0x224] ss:$16 sps:$4 sm:$0xff]   ;;  %v2989_v4 = vld [vmem:[#allocation14 + $0x22c] ss:$16 sps:$4 sm:$0xff]  }
 0x747   :  { %v3038_v45 = vld [vmem:[#allocation14 + $0x340] ss:$16 sps:$4 sm:$0xff]  }
 0x748   :  { %v1040_v56 = vmul.f32 %v1026_v41, %v1014_v52  ;;  %v1039_v57 = vmul.f32 %v1022_v42, %v1013_v53  ;;  %v1042_v58 = vmul.f32 %v1034_v43, %v1016_v54  ;;  %v1041_v59 = vmul.f32 %v1030_v44, %v1015_v48  ;;  %v3032_v41 = vld [vmem:[#allocation14 + $0x320] ss:$16 sps:$4 sm:$0xff]   ;;  %v3035_v42 = vld [vmem:[#allocation14 + $0x328] ss:$16 sps:$4 sm:$0xff]   ;;  %v3040_v43 = vld [vmem:[#allocation14 + $0x344] ss:$16 sps:$4 sm:$0xff]  }
 0x749   :  { %v3043_v44 = vld [vmem:[#allocation14 + $0x34c] ss:$16 sps:$4 sm:$0xff]   ;;  %v3044_v52 = vld [vmem:[#allocation14 + $0x360] ss:$16 sps:$4 sm:$0xff]   ;;  %v3047_v53 = vld [vmem:[#allocation14 + $0x368] ss:$16 sps:$4 sm:$0xff]  }
 0x74a   :  { %v1066_v60 = vadd.f32 %v1052_v46, %v1040_v56  ;;  %v1065_v61 = vadd.f32 %v1048_v47, %v1039_v57  ;;  %v3710_v62 = vadd.f32 %v1056_v50, %v1041_v59  ;;  %v1068_v63 = vadd.f32 %v1060_v55, %v1042_v58  ;;  %v3041_v46 = vld [vmem:[#allocation14 + $0x348] ss:$16 sps:$4 sm:$0xff]   ;;  %v3046_v47 = vld [vmem:[#allocation14 + $0x364] ss:$16 sps:$4 sm:$0xff]   ;;  %v3049_v50 = vld [vmem:[#allocation14 + $0x36c] ss:$16 sps:$4 sm:$0xff]  }
 0x74b   :  { %v3052_v54 = vld [vmem:[#allocation14 + $0x384] ss:$16 sps:$4 sm:$0xff]   ;;  %v3055_v48 = vld [vmem:[#allocation14 + $0x38c] ss:$16 sps:$4 sm:$0xff]   ;;  %v3050_v55 = vld [vmem:[#allocation14 + $0x380] ss:$16 sps:$4 sm:$0xff]  }
 0x74c   :  { %v1070_v0 = vpack.c.bf16 %v1066_v60, %v1066_v60  ;;  %v1069_v7 = vpack.c.bf16 %v1065_v61, %v1065_v61  ;;  %v1072_v3 = vpack.c.bf16 %v1068_v63, %v1068_v63  ;;  %v3053_v56 = vld [vmem:[#allocation14 + $0x388] ss:$16 sps:$4 sm:$0xff]   ;;  %v3058_v57 = vld [vmem:[#allocation14 + $0x3a4] ss:$16 sps:$4 sm:$0xff]   ;;  %v3061_v58 = vld [vmem:[#allocation14 + $0x3ac] ss:$16 sps:$4 sm:$0xff]  }
 0x74d   :  { %v3056_v59 = vld [vmem:[#allocation14 + $0x3a0] ss:$16 sps:$4 sm:$0xff]   ;;  %v3059_v60 = vld [vmem:[#allocation14 + $0x3a8] ss:$16 sps:$4 sm:$0xff]   ;;  %v3064_v61 = vld [vmem:[#allocation14 + $0x3c4] ss:$16 sps:$4 sm:$0xff]  }
 0x74e   :  { %1895 = vmatprep.mubr.bf16.mxu0 %v1070_v0  ;;  %1977 = vmatprep.mubr.bf16.mxu1 %v1070_v0  ;;  %v3067_v63 = vld [vmem:[#allocation14 + $0x3cc] ss:$16 sps:$4 sm:$0xff]   ;;  %v3062_v0 = vld [vmem:[#allocation14 + $0x3c0] ss:$16 sps:$4 sm:$0xff]  }
 0x74f   :  { %1896 = vmatmul.mubr.bf16.vlgmr.msra.gmra.mrb[8].mxu0 %v1069_v7  ;;  %1978 = vmatmul.mubr.bf16.vlgmr.msra.gmra.mrb[8].mxu1 %v1069_v7  ;;  %v3073_v7 = vld [vmem:[#allocation14 + $0x3ec] ss:$16 sps:$4 sm:$0xff]  }
 0x750   :  { %1905 = vmatpush1.bf16.msra.mxu0 %v2978_v5  ;;  %1987 = vmatpush1.bf16.msra.mxu1 %v2981_v2  ;;  %v3065_v5 = vld [vmem:[#allocation14 + $0x3c8] ss:$16 sps:$4 sm:$0xff]   ;;  %v3070_v2 = vld [vmem:[#allocation14 + $0x3e4] ss:$16 sps:$4 sm:$0xff]  }
 0x751   :  { %1936 = vmatprep.mubr.bf16.mxu0 %v1072_v3  ;;  %2018 = vmatprep.mubr.bf16.mxu1 %v1072_v3  ;;  %v1071_v3 = vpack.c.bf16 %v3710_v62, %v3710_v62  ;;  %v3083_v62 = vld [vmem:[#allocation16 + $0xd0] sm:$0xff]  }
 0x752   :  { %1906 = vmatprep.subr.bf16.mxu0 %v2986_v1  ;;  %1988 = vmatprep.subr.bf16.mxu1 %v2989_v4  ;;  %v3068_v1 = vld [vmem:[#allocation14 + $0x3e0] ss:$16 sps:$4 sm:$0xff]   ;;  %v3071_v4 = vld [vmem:[#allocation14 + $0x3e8] ss:$16 sps:$4 sm:$0xff]  }
 0x754   :  { %1907 = vmatpush1.bf16.msra.mxu0 %v2984_v9  ;;  %1989 = vmatpush1.bf16.msra.mxu1 %v2987_v6  ;;  %v3074_v9 = vld [vmem:[#allocation16 + $0x40] sm:$0xff]  }
 0x755   :  { %1908 = vmatprep.subr.bf16.mxu0 %v2992_v8  ;;  %1990 = vmatprep.subr.bf16.mxu1 %v2995_v11  ;;  %v3075_v6 = vld [vmem:[#allocation16 + $0xc0] sm:$0xff]  }
 0x756   :  { %v3076_v8 = vld [vmem:[#allocation16] sm:$0xff]  }
 0x757   :  { %v3077_v11 = vld [vmem:[#allocation16 + $0x80] sm:$0xff]  }
 0x758   :  { %1909 = vmatpush1.bf16.msra.mxu0 %v2990_v13  ;;  %1991 = vmatpush1.bf16.msra.mxu1 %v2993_v10  ;;  %v3078_v13 = vld [vmem:[#allocation16 + $0x48] sm:$0xff]  }
 0x759   :  { %1910 = vmatprep.subr.bf16.mxu0 %v2998_v14  ;;  %1992 = vmatprep.subr.bf16.mxu1 %v3001_v12  ;;  %v3079_v10 = vld [vmem:[#allocation16 + $0xc8] sm:$0xff]  }
 0x75a   :  { %v3080_v14 = vld [vmem:[#allocation16 + $0x8] sm:$0xff]  }
 0x75b   :  { %v3081_v12 = vld [vmem:[#allocation16 + $0x88] sm:$0xff]  }
 0x75c   :  { %1911 = vmatpush1.bf16.msra.mxu0 %v2996_v15  ;;  %1993 = vmatpush1.bf16.msra.mxu1 %v2999_v16  ;;  %v3082_v15 = vld [vmem:[#allocation16 + $0x50] sm:$0xff]  }
 0x75d   :  { %1912 = vmatprep.subr.bf16.mxu0 %v3004_v17  ;;  %1994 = vmatprep.subr.bf16.mxu1 %v3007_v18  ;;  %v3084_v16 = vld [vmem:[#allocation16 + $0x10] sm:$0xff]   ;;  %v3086_v18 = vld [vmem:[#allocation16 + $0x58] sm:$0xff]  }
 0x75e   :  { %v3085_v17 = vld [vmem:[#allocation16 + $0x90] sm:$0xff]  }
 0x760   :  { %1913 = vmatpush1.bf16.msra.mxu0 %v3002_v19  ;;  %1995 = vmatpush1.bf16.msra.mxu1 %v3005_v20  ;;  %v3087_v19 = vld [vmem:[#allocation16 + $0xd8] sm:$0xff]  }
 0x761   :  { %1914 = vmatprep.subr.bf16.mxu0 %v3010_v21  ;;  %1996 = vmatprep.subr.bf16.mxu1 %v3013_v22  ;;  %v3088_v20 = vld [vmem:[#allocation16 + $0x18] sm:$0xff]   ;;  %v3090_v22 = vld [vmem:[#allocation16 + $0x60] sm:$0xff]  }
 0x762   :  { %v3089_v21 = vld [vmem:[#allocation16 + $0x98] sm:$0xff]  }
 0x764   :  { %1915 = vmatpush1.bf16.msra.mxu0 %v3008_v23  ;;  %1997 = vmatpush1.bf16.msra.mxu1 %v3011_v24  ;;  %v3091_v23 = vld [vmem:[#allocation16 + $0xe0] sm:$0xff]  }
 0x765   :  { %1916 = vmatprep.subr.bf16.mxu0 %v3016_v25  ;;  %1998 = vmatprep.subr.bf16.mxu1 %v3019_v26  ;;  %v3092_v24 = vld [vmem:[#allocation16 + $0x20] sm:$0xff]   ;;  %v3094_v26 = vld [vmem:[#allocation16 + $0x68] sm:$0xff]  }
 0x766   :  { %v3093_v25 = vld [vmem:[#allocation16 + $0xa0] sm:$0xff]  }
 0x768   :  { %1917 = vmatpush1.bf16.msra.mxu0 %v3014_v27  ;;  %1999 = vmatpush1.bf16.msra.mxu1 %v3017_v28  ;;  %v3095_v27 = vld [vmem:[#allocation16 + $0xe8] sm:$0xff]  }
 0x769   :  { %1918 = vmatprep.subr.bf16.mxu0 %v3022_v29  ;;  %2000 = vmatprep.subr.bf16.mxu1 %v3025_v30  ;;  %v3096_v28 = vld [vmem:[#allocation16 + $0x28] sm:$0xff]   ;;  %v3098_v30 = vld [vmem:[#allocation16 + $0x70] sm:$0xff]  }
 0x76a   :  { %v3097_v29 = vld [vmem:[#allocation16 + $0xa8] sm:$0xff]  }
 0x76c   :  { %1919 = vmatpush1.bf16.msra.mxu0 %v3020_v31  ;;  %2001 = vmatpush1.bf16.msra.mxu1 %v3023_v32  ;;  %v3099_v31 = vld [vmem:[#allocation16 + $0xf0] sm:$0xff]  }
 0x76d   :  { %1920 = vmatprep.subr.bf16.mxu0 %v3028_v33  ;;  %2002 = vmatprep.subr.bf16.mxu1 %v3031_v34  ;;  %v3100_v32 = vld [vmem:[#allocation16 + $0x30] sm:$0xff]   ;;  %v3102_v34 = vld [vmem:[#allocation16 + $0x78] sm:$0xff]  }
 0x76e   :  { %v3101_v33 = vld [vmem:[#allocation16 + $0xb0] sm:$0xff]  }
 0x770   :  { %1921 = vmatpush1.bf16.msra.mxu0 %v3026_v36  ;;  %2003 = vmatpush1.bf16.msra.mxu1 %v3029_v38  ;;  %v3103_v36 = vld [vmem:[#allocation16 + $0xf8] sm:$0xff]  }
 0x771   :  { %1922 = vmatprep.subr.bf16.mxu0 %v3034_v39  ;;  %2004 = vmatprep.subr.bf16.mxu1 %v3037_v40  ;;  %v3104_v38 = vld [vmem:[#allocation16 + $0x38] sm:$0xff]   ;;  %v1201_v40 = vld [vmem:[%s3750_s14] sm:$0xf] }
 0x772   :  { %v3105_v39 = vld [vmem:[#allocation16 + $0xb8] sm:$0xff]  }
 0x774   :  { %1923 = vmatpush1.bf16.msra.mxu0 %v3032_v41  ;;  %2005 = vmatpush1.bf16.msra.mxu1 %v3035_v42  ;;  %v1206_v41 = vrot.slane %v1201_v40, %v3614_v49  ;;  %v1214_v42 = vrot.slane %v1201_v40, %v3648_v35 }
 0x775   :  { %1924 = vmatprep.subr.bf16.mxu0 %v3040_v43  ;;  %2006 = vmatprep.subr.bf16.mxu1 %v3043_v44  ;;  %v1210_v43 = vrot.slane %v1201_v40, %v3620_v51  ;;  %v1218_v44 = vrot.slane %v1201_v40, %v3654_v37 }
 0x778   :  { %1925 = vmatpush1.bf16.msra.mxu0 %v3038_v45  ;;  %2007 = vmatpush1.bf16.msra.mxu1 %v3041_v46 }
 0x779   :  { %1926 = vmatprep.subr.bf16.mxu0 %v3046_v47  ;;  %2008 = vmatprep.subr.bf16.mxu1 %v3049_v50 }
 0x77c   :  { %1927 = vmatpush1.bf16.msra.mxu0 %v3044_v52  ;;  %2009 = vmatpush1.bf16.msra.mxu1 %v3047_v53 }
 0x77d   :  { %1928 = vmatprep.subr.bf16.mxu0 %v3052_v54  ;;  %2010 = vmatprep.subr.bf16.mxu1 %v3055_v48 }
 0x780   :  { %1929 = vmatpush1.bf16.msra.mxu0 %v3050_v55  ;;  %2011 = vmatpush1.bf16.msra.mxu1 %v3053_v56 }
 0x781   :  { %1930 = vmatprep.subr.bf16.mxu0 %v3058_v57  ;;  %2012 = vmatprep.subr.bf16.mxu1 %v3061_v58 }
 0x784   :  { %1931 = vmatpush1.bf16.msra.mxu0 %v3056_v59  ;;  %2013 = vmatpush1.bf16.msra.mxu1 %v3059_v60 }
 0x785   :  { %1932 = vmatprep.subr.bf16.mxu0 %v3064_v61  ;;  %2014 = vmatprep.subr.bf16.mxu1 %v3067_v63 }
 0x788   :  { %1933 = vmatpush1.bf16.msra.mxu0 %v3062_v0  ;;  %2015 = vmatpush1.bf16.msra.mxu1 %v3065_v5 }
 0x789   :  { %1934 = vmatprep.subr.bf16.mxu0 %v3070_v2  ;;  %2016 = vmatprep.subr.bf16.mxu1 %v3073_v7 }
 0x78c   :  { %1935 = vmatpush1.bf16.msra.mxu0 %v3068_v1  ;;  %2017 = vmatpush1.bf16.msra.mxu1 %v3071_v4 }
 0x78d   :  { %2681 = vmatprep.subr.bf16.mxu0 %v3074_v9  ;;  %2703 = vmatprep.subr.bf16.mxu1 %v3075_v6 }
 0x78f   :  { %1937 = vmatmul.mubr.bf16.vlgmr.msra.gmra.mrb[8].mxu0 %v1071_v3  ;;  %2019 = vmatmul.mubr.bf16.vlgmr.msra.gmra.mrb[8].mxu1 %v1071_v3 }
 0x790   :  { %2682 = vmatpush3.bf16.msra.mxu0 %v3076_v8  ;;  %2704 = vmatpush3.bf16.msra.mxu1 %v3077_v11 }
 0x791   :  { %2683 = vmatprep.subr.bf16.mxu0 %v3078_v13  ;;  %2705 = vmatprep.subr.bf16.mxu1 %v3079_v10 }
 0x794   :  { %2684 = vmatpush3.bf16.msra.mxu0 %v3080_v14  ;;  %2706 = vmatpush3.bf16.msra.mxu1 %v3081_v12 }
 0x795   :  { %2685 = vmatprep.subr.bf16.mxu0 %v3082_v15  ;;  %2707 = vmatprep.subr.bf16.mxu1 %v3083_v62 }
 0x798   :  { %2686 = vmatpush3.bf16.msra.mxu0 %v3084_v16  ;;  %2708 = vmatpush3.bf16.msra.mxu1 %v3085_v17  ;;  %v2646_v17 = vld [vmem:[%s3752_s16] ss:$0 sm:$0xff] }
 0x799   :  { %2687 = vmatprep.subr.bf16.mxu0 %v3086_v18  ;;  %2709 = vmatprep.subr.bf16.mxu1 %v3087_v19 }
 0x79c   :  { %2688 = vmatpush3.bf16.msra.mxu0 %v3088_v20  ;;  %2710 = vmatpush3.bf16.msra.mxu1 %v3089_v21 }
 0x79d   :  { %2689 = vmatprep.subr.bf16.mxu0 %v3090_v22  ;;  %2711 = vmatprep.subr.bf16.mxu1 %v3091_v23 }
 0x7a0   :  { %2690 = vmatpush3.bf16.msra.mxu0 %v3092_v24  ;;  %2712 = vmatpush3.bf16.msra.mxu1 %v3093_v25 }
 0x7a1   :  { %2691 = vmatprep.subr.bf16.mxu0 %v3094_v26  ;;  %2713 = vmatprep.subr.bf16.mxu1 %v3095_v27 }
 0x7a4   :  { %2692 = vmatpush3.bf16.msra.mxu0 %v3096_v28  ;;  %2714 = vmatpush3.bf16.msra.mxu1 %v3097_v29 }
 0x7a5   :  { %2693 = vmatprep.subr.bf16.mxu0 %v3098_v30  ;;  %2715 = vmatprep.subr.bf16.mxu1 %v3099_v31 }
 0x7a8   :  { %2694 = vmatpush3.bf16.msra.mxu0 %v3100_v32  ;;  %2716 = vmatpush3.bf16.msra.mxu1 %v3101_v33 }
 0x7a9   :  { %2695 = vmatprep.subr.bf16.mxu0 %v3102_v34  ;;  %2717 = vmatprep.subr.bf16.mxu1 %v3103_v36 }
 0x7ac   :  { %2696 = vmatpush3.bf16.msra.mxu0 %v3104_v38  ;;  %2718 = vmatpush3.bf16.msra.mxu1 %v3105_v39 }
 0x862   :  { %v1938_v45 = vpop.f32.mrb[8].mxu0  ;;  %v2020_v46 = vpop.f32.mrb[8].mxu1 }
 0x863   :  { %v2731_v47 = vadd.f32 %v1938_v45, %v1206_v41  ;;  %v2733_v50 = vadd.f32 %v2020_v46, %v1214_v42  ;;  %v1940_v52 = vpop.f32.mrb[9].mxu0  ;;  %v2022_v53 = vpop.f32.mrb[9].mxu1 }
 0x864   :  { %v2732_v54 = vadd.f32 %v1940_v52, %v1210_v43  ;;  %v2734_v48 = vadd.f32 %v2022_v53, %v1218_v44  ;;  %v1942_v55 = vpop.f32.mrb[10].mxu0  ;;  %v2024_v56 = vpop.f32.mrb[10].mxu1 }
 0x865   :  { %v2642_v57 = vmul.f32 -1.442695, %v2731_v47  ;;  %v2644_v58 = vmul.f32 -1.442695, %v2733_v50  ;;  %v1943_v59 = vpop.f32.mrb[11].mxu0  ;;  %v2025_v49 = vpop.f32.mrb[11].mxu1 }
 0x866   :  { %v2643_v60 = vmul.f32 -1.442695, %v2732_v54  ;;  %v2645_v35 = vmul.f32 -1.442695, %v2734_v48 }
 0x867   :  { %3140 = vpow2.f32 %v2642_v57 }
 0x868   :  { %3142 = vpow2.f32 %v2644_v58 }
 0x869   :  { %3144 = vpow2.f32 %v2643_v60 }
 0x86a   :  { %3146 = vpow2.f32 %v2645_v35 }
 0x871   :  { %v3141_v51 = vpop.eup %3140 }
 0x872   :  { %v3143_v37 = vpop.eup %3142  ;;  %v2039_v61 = vadd.f32 1.0, %v3141_v51 }
 0x873   :  { %v3145_v63 = vpop.eup %3144  ;;  %v2041_v0 = vadd.f32 1.0, %v3143_v37 }
 0x874   :  { %v3147_v5 = vpop.eup %3146  ;;  %3148 = vrcp.f32 %v2039_v61  ;;  %v2040_v2 = vadd.f32 1.0, %v3145_v63 }
 0x875   :  { %3150 = vrcp.f32 %v2041_v0  ;;  %v2042_v7 = vadd.f32 1.0, %v3147_v5 }
 0x876   :  { %3152 = vrcp.f32 %v2040_v2 }
 0x877   :  { %3154 = vrcp.f32 %v2042_v7 }
 0x87e   :  { %v3149_v1 = vpop.eup %3148 }
 0x87f   :  { %v3151_v4 = vpop.eup %3150  ;;  %v2051_v9 = vmul.f32 %v3149_v1, %v2731_v47 }
 0x880   :  { %v3153_v3 = vpop.eup %3152  ;;  %v2053_v8 = vmul.f32 %v3151_v4, %v2733_v50 }
 0x881   :  { %v3155_v6 = vpop.eup %3154  ;;  %v2052_v11 = vmul.f32 %v3153_v3, %v2732_v54  ;;  %v2055_v14 = vpack.c.bf16 %v2051_v9, %v2051_v9 }
 0x882   :  { %v2054_v13 = vmul.f32 %v3155_v6, %v2734_v48  ;;  %v2057_v15 = vpack.c.bf16 %v2053_v8, %v2053_v8 }
 0x883   :  { %v2056_v10 = vpack.c.bf16 %v2052_v11, %v2052_v11 }
 0x884   :  { %v2058_v12 = vpack.c.bf16 %v2054_v13, %v2054_v13 }
 0x885   :  { %2354 = vmatprep.mubr.bf16.mxu0 %v2056_v10 }
 0x886   :  { %2394 = vmatprep.mubr.bf16.mxu1 %v2058_v12  ;;  %2355 = vmatmul.mubr.bf16.vlgmr.msra.gmra.mrb[12].mxu0 %v2055_v14 }
 0x887   :  { %2395 = vmatmul.mubr.bf16.vlgmr.msra.gmra.mrb[12].mxu1 %v2057_v15 }
 0x959   :  { %v2697_v62 = vpop.f32.mrb[12].mxu0 }
 0x95a   :  { %v2719_v16 = vpop.f32.mrb[12].mxu1  ;;  %v2698_v18 = vpop.f32.mrb[13].mxu0 }
 0x95b   :  { %v2699_v19 = vadd.f32 %v2698_v18, %v2697_v62  ;;  %v2720_v20 = vpop.f32.mrb[13].mxu1  ;;  %v2700_v21 = vpop.f32.mrb[14].mxu0 }
 0x95c   :  { %v2721_v22 = vadd.f32 %v2720_v20, %v2719_v16  ;;  %v2722_v23 = vpop.f32.mrb[14].mxu1  ;;  %v2701_v24 = vpop.f32.mrb[15].mxu0 }
 0x95d   :  { %v2357_v25 = vadd.f32 %v2699_v19, %v2646_v17  ;;  %v2723_v26 = vpop.f32.mrb[15].mxu1 }
 0x95f   :  { %v2397_v27 = vadd.f32 %v2721_v22, %v2357_v25 }
 0x961   :  { %v2402_v28 = vpack.c.bf16 %v2397_v27, %v2397_v27 }
 0x963   :  { %2403 = vst [vmem:[#allocation17] sm:$0xf] %v2402_v28 }
 0x964   :  { %3365 = shalt.err (!%p3362_p6)
}
 0x965   :  { %s3366_s5 = scalar_lea.hbm %s3753_s17, 64 }
 0x966   :  { %p3367_p7 = scmp.ne.s32.totalorder %s3753_s17, %s3366_s5  ;;  %p3370_p8 = scmp.lt.u32.totalorder %s3366_s5, %s3753_s17 }
 0x968   :  { %p3372_p9 = pnand %p3370_p8, %p3367_p7 }
 0x96a   :  { %3375 = shalt.err (!%p3372_p9)
}
 0x96b   :  { %2413 = dma.vmem_to_hbm [thread:$0]  %s2411_s28, 64, %s3753_s17, [#allocation4]  }
 0x96c   :  { %3386 = dma.done.wait [#allocation4], 64  }
 0x96d   :  { %3387 = vsyncadd [#allocation4], 4294967232 }
 0x96e   :  { %2417 = vsyncpa [#allocation3], 1 }
 0x96f   :  { %2418 = vsyncpa [#allocation6], 1 }
 0x970   :  { %2419 = vsyncpa [#allocation9], 1 }
 0x971   :  { %2420 = vsyncpa [#allocation12], 1 }
 0x972   :  { %2421 = vsyncpa [#allocation15], 1 }
 0x973   :  { %2422 = vsyncpa [#allocation4], 1 }

</bundles_post_ra>
